<compile_context>
chip_gen: v7x
topology: tpu7x:2x2x1
jax: 0.10.0
libtpu: 0.0.40
codegen_flags: <defaults>
</compile_context>

<pallas_src>
import math

import jax
import jax.numpy as jnp
from jax.experimental import pallas as pl
from jax.experimental.pallas import tpu as pltpu

D_MODEL = 32
NUM_HEADS = 4
HEAD_DIM = D_MODEL // NUM_HEADS
D_FF = 64
LN_EPS = 1e-5        # PyTorch nn.LayerNorm default


# ----------------------------- in-kernel helpers -----------------------------

def _multihead_attention(q, k, v, bias, scale):
    """q: (Nq, D) f32, k/v: (Nk, D) f32, bias: (Nq, Nk) f32 additive -> (Nq, D).

    All heads are processed in one batched einsum + ONE softmax pass; no
    per-head Python loop, no lane concatenate."""
    nq = q.shape[0]
    nk = k.shape[0]
    qh = q.reshape(nq, NUM_HEADS, HEAD_DIM).transpose(1, 0, 2).astype(jnp.bfloat16)
    kh = k.reshape(nk, NUM_HEADS, HEAD_DIM).transpose(1, 0, 2).astype(jnp.bfloat16)
    vh = v.reshape(nk, NUM_HEADS, HEAD_DIM).transpose(1, 0, 2).astype(jnp.bfloat16)

    # (H, Nq, Nk) scores, bf16 MXU inputs, f32 accumulate.
    s = jnp.einsum('hqd,hkd->hqk', qh, kh,
                   preferred_element_type=jnp.float32) * scale
    s = s + bias[None, :, :]                       # masked_fill(mask==0, -1e9)
    s = s - jnp.max(s, axis=-1, keepdims=True)     # stable softmax (f32 VPU)
    p = jnp.exp(s)                                 # EUP
    # reciprocal on the EUP instead of a VPU divide
    p = p * pl.reciprocal(jnp.sum(p, axis=-1, keepdims=True), approx=True)

    o = jnp.einsum('hqk,hkd->hqd', p.astype(jnp.bfloat16), vh,
                   preferred_element_type=jnp.float32)
    return o.transpose(1, 0, 2).reshape(nq, D_MODEL)


def _add_layernorm(x, y, g, b):
    """LayerNorm(x + y) over the last dim (biased variance, PyTorch-style). f32."""
    h = x + y
    mean = jnp.mean(h, axis=-1, keepdims=True)
    c = h - mean
    var = jnp.mean(c * c, axis=-1, keepdims=True)
    return c * jax.lax.rsqrt(var + LN_EPS) * g + b


def _linear(x, w_ref, b_ref):
    """bf16 x bf16 MXU matmul with f32 accumulate + f32 bias."""
    return jnp.dot(x.astype(jnp.bfloat16), w_ref[...],
                   preferred_element_type=jnp.float32) + b_ref[...]


# ---------------------------- fused decoder-layer kernel ---------------------

def _decoder_layer_kernel(x_ref, enc_ref, sbias_ref, cbias_ref,
                          wqkv_ref, bqkv_ref, wo_s_ref, bo_s_ref,
                          wq_c_ref, bq_c_ref, wkv_c_ref, bkv_c_ref,
                          wo_c_ref, bo_c_ref,
                          w1_ref, b1_ref, w2_ref, b2_ref,
                          ln_g_ref, ln_b_ref,
                          out_ref):
    D = D_MODEL
    scale = 1.0 / math.sqrt(HEAD_DIM)

    x = x_ref[...]           # (B*Lt, D) f32, batch folded into sublanes
    enc = enc_ref[...]       # (B*Ls, D) f32
    sbias = sbias_ref[...]   # (B*Lt, B*Lt) additive block-diagonal self-attn bias
    cbias = cbias_ref[...]   # (B*Lt, B*Ls) additive block-diagonal cross-attn bias
    ln_g = ln_g_ref[...]     # (3, D)
    ln_b = ln_b_ref[...]     # (3, D)

    # ---- 1. masked multi-head self-attention (fused QKV projection) --------
    qkv = _linear(x, wqkv_ref, bqkv_ref)
    a = _multihead_attention(qkv[:, :D], qkv[:, D:2 * D], qkv[:, 2 * D:],
                             sbias, scale)
    a = _linear(a, wo_s_ref, bo_s_ref)
    x = _add_layernorm(x, a, ln_g[0:1, :], ln_b[0:1, :])

    # ---- 2. encoder-decoder cross-attention (fused KV projection) ----------
    qc = _linear(x, wq_c_ref, bq_c_ref)
    kv = _linear(enc, wkv_c_ref, bkv_c_ref)
    a = _multihead_attention(qc, kv[:, :D], kv[:, D:], cbias, scale)
    a = _linear(a, wo_c_ref, bo_c_ref)
    x = _add_layernorm(x, a, ln_g[1:2, :], ln_b[1:2, :])

    # ---- 3. feed-forward (Linear -> ReLU -> Linear) -------------------------
    h = _linear(x, w1_ref, b1_ref)
    h = jnp.maximum(h, 0.0)
    f = _linear(h, w2_ref, b2_ref)
    x = _add_layernorm(x, f, ln_g[2:3, :], ln_b[2:3, :])

    out_ref[...] = x


# --------------------------------- wrapper -----------------------------------

@jax.jit
def decoder_layer_forward(params, x, enc_output, src_mask, tgt_mask):
    """DecoderLayer.forward(x, enc_output, src_mask, tgt_mask) as ONE pallas_call.

    Batch is folded into the row dimension; batch independence is enforced with
    block-diagonal additive attention biases built here (compare/select hoisted
    out of the kernel)."""
    B, Lt, D = x.shape
    Ls = enc_output.shape[1]
    Nq, Nk = B * Lt, B * Ls

    x2 = x.reshape(Nq, D).astype(jnp.float32)
    enc2 = enc_output.reshape(Nk, D).astype(jnp.float32)

    # masked_fill(mask == 0, -1e9) -> additive bias; block-diagonal over batch.
    eye = jnp.eye(B, dtype=jnp.float32)
    tgt_m = tgt_mask.astype(jnp.float32).reshape(B, Lt, Lt)   # (B,1,Lt,Lt)
    src_m = src_mask.astype(jnp.float32).reshape(B, Ls)       # (B,1,1,Ls)
    self_m = jnp.einsum('bij,bc->bicj', tgt_m, eye).reshape(Nq, Nq)
    cross_m = jnp.broadcast_to(
        jnp.einsum('bj,bc->bcj', src_m, eye)[:, None, :, :],
        (B, Lt, B, Ls)).reshape(Nq, Nk)
    self_bias = jnp.where(self_m == 0.0, -1e9, 0.0).astype(jnp.float32)
    cross_bias = jnp.where(cross_m == 0.0, -1e9, 0.0).astype(jnp.float32)

    sa, ca, ff = params["self_attn"], params["cross_attn"], params["ffn"]
    weights = (sa["wqkv"], sa["bqkv"], sa["wo"], sa["bo"],
               ca["wq"], ca["bq"], ca["wkv"], ca["bkv"], ca["wo"], ca["bo"],
               ff["w1"], ff["b1"], ff["w2"], ff["b2"],
               params["ln_g"], params["ln_b"])

    out2 = pl.pallas_call(
        _decoder_layer_kernel,
        out_shape=jax.ShapeDtypeStruct((Nq, D), jnp.float32),
        # grid=() -> single step, every operand is one whole-array VMEM block;
        # no pipeline bookkeeping, no double-buffered constant weights.
        compiler_params=pltpu.CompilerParams(vmem_limit_bytes=32 * 1024 * 1024),
    )(x2, enc2, self_bias, cross_bias, *weights)

    return out2.reshape(B, Lt, D)


# --------------------------- pure-JAX reference -------------------------------

def _attn_ref(Q, K, V, mask):
    B, Lq, D = Q.shape
    Lk = K.shape[1]
    Qh = Q.reshape(B, Lq, NUM_HEADS, HEAD_DIM).transpose(0, 2, 1, 3)
    Kh = K.reshape(B, Lk, NUM_HEADS, HEAD_DIM).transpose(0, 2, 1, 3)
    Vh = V.reshape(B, Lk, NUM_HEADS, HEAD_DIM).transpose(0, 2, 1, 3)
    s = jnp.einsum('bhqd,bhkd->bhqk', Qh, Kh) / math.sqrt(HEAD_DIM)
    s = jnp.where(mask == 0.0, -1e9, s)
    p = jax.nn.softmax(s, axis=-1)
    o = jnp.einsum('bhqk,bhkd->bhqd', p, Vh)
    return o.transpose(0, 2, 1, 3).reshape(B, Lq, D)


def _ln_ref(x, g, b):
    m = jnp.mean(x, -1, keepdims=True)
    v = jnp.mean((x - m) ** 2, -1, keepdims=True)
    return (x - m) * jax.lax.rsqrt(v + LN_EPS) * g + b


def decoder_layer_ref(p, x, enc, src_mask, tgt_mask):
    f32 = lambda a: a.astype(jnp.float32)
    D = D_MODEL
    sa, ca, ff = p["self_attn"], p["cross_attn"], p["ffn"]
    qkv = x @ f32(sa["wqkv"]) + sa["bqkv"]
    a = _attn_ref(qkv[..., :D], qkv[..., D:2 * D], qkv[..., 2 * D:], tgt_mask)
    a = a @ f32(sa["wo"]) + sa["bo"]
    x = _ln_ref(x + a, p["ln_g"][0], p["ln_b"][0])
    qc = x @ f32(ca["wq"]) + ca["bq"]
    kv = enc @ f32(ca["wkv"]) + ca["bkv"]
    a = _attn_ref(qc, kv[..., :D], kv[..., D:], src_mask)
    a = a @ f32(ca["wo"]) + ca["bo"]
    x = _ln_ref(x + a, p["ln_g"][1], p["ln_b"][1])
    h = jnp.maximum(x @ f32(ff["w1"]) + ff["b1"], 0.0)
    f = h @ f32(ff["w2"]) + ff["b2"]
    return _ln_ref(x + f, p["ln_g"][2], p["ln_b"][2])


# ------------------------ deterministic parameter init ------------------------

def _uniform(key, shape, fan_in):
    bound = 1.0 / math.sqrt(fan_in)
    return jax.random.uniform(key, shape, jnp.float32, -bound, bound)


def _linear_wb(key, d_in, d_out):
    kw, kb = jax.random.split(key)
    return _uniform(kw, (d_in, d_out), d_in), _uniform(kb, (1, d_out), d_in)


def init_decoder_params(key):
    bf16 = lambda a: a.astype(jnp.bfloat16)   # weight matrices stored bf16 (MXU path)
    ks = jax.random.split(key, 10)
    wq, bq = _linear_wb(ks[0], D_MODEL, D_MODEL)
    wk, bk = _linear_wb(ks[1], D_MODEL, D_MODEL)
    wv, bv = _linear_wb(ks[2], D_MODEL, D_MODEL)
    wo_s, bo_s = _linear_wb(ks[3], D_MODEL, D_MODEL)
    self_attn = {"wqkv": bf16(jnp.concatenate([wq, wk, wv], axis=1)),
                 "bqkv": jnp.concatenate([bq, bk, bv], axis=1),
                 "wo": bf16(wo_s), "bo": bo_s}
    wqc, bqc = _linear_wb(ks[4], D_MODEL, D_MODEL)
    wkc, bkc = _linear_wb(ks[5], D_MODEL, D_MODEL)
    wvc, bvc = _linear_wb(ks[6], D_MODEL, D_MODEL)
    wo_c, bo_c = _linear_wb(ks[7], D_MODEL, D_MODEL)
    cross_attn = {"wq": bf16(wqc), "bq": bqc,
                  "wkv": bf16(jnp.concatenate([wkc, wvc], axis=1)),
                  "bkv": jnp.concatenate([bkc, bvc], axis=1),
                  "wo": bf16(wo_c), "bo": bo_c}
    w1, b1 = _linear_wb(ks[8], D_MODEL, D_FF)
    w2, b2 = _linear_wb(ks[9], D_FF, D_MODEL)
    return {"self_attn": self_attn, "cross_attn": cross_attn,
            "ffn": {"w1": bf16(w1), "b1": b1, "w2": bf16(w2), "b2": b2},
            "ln_g": jnp.ones((3, D_MODEL), jnp.float32),
            "ln_b": jnp.zeros((3, D_MODEL), jnp.float32)}


# ------------------------------------ main ------------------------------------

if __name__ == "__main__":
    key = jax.random.PRNGKey(0)
    kp, kx, ke = jax.random.split(key, 3)

    B, TGT_LEN, SRC_LEN = 2, 8, 8
    params = init_decoder_params(kp)

    x = jax.random.normal(kx, (B, TGT_LEN, D_MODEL), jnp.float32)
    enc_output = jax.random.normal(ke, (B, SRC_LEN, D_MODEL), jnp.float32)
    src_mask = jnp.ones((B, 1, 1, SRC_LEN), jnp.float32)
    tgt_mask = jnp.broadcast_to(
        jnp.tril(jnp.ones((TGT_LEN, TGT_LEN), jnp.float32))[None, None, :, :],
        (B, 1, TGT_LEN, TGT_LEN))

    out = decoder_layer_forward(params, x, enc_output, src_mask, tgt_mask)
    out = jax.block_until_ready(out)

    ref = decoder_layer_ref(params, x, enc_output, src_mask, tgt_mask)

    assert out.shape == (B, TGT_LEN, D_MODEL)
    assert bool(jnp.all(jnp.isfinite(out)))
    # Tolerance accounts for bf16 MXU operands (f32 accumulate) vs the f32 reference.
    assert bool(jnp.allclose(out, ref, atol=5e-2, rtol=5e-2))
    print("KERNEL_OK")
</pallas_src>

<mosaic_0001>
module attributes {stable_mosaic.version = 11 : i64} {
  func.func @_decoder_layer_kernel(%arg0: memref<16x32xf32, #tpu.memory_space<vmem>>, %arg1: memref<16x32xf32, #tpu.memory_space<vmem>>, %arg2: memref<16x16xf32, #tpu.memory_space<vmem>>, %arg3: memref<16x16xf32, #tpu.memory_space<vmem>>, %arg4: memref<32x96xbf16, #tpu.memory_space<vmem>>, %arg5: memref<1x96xf32, #tpu.memory_space<vmem>>, %arg6: memref<32x32xbf16, #tpu.memory_space<vmem>>, %arg7: memref<1x32xf32, #tpu.memory_space<vmem>>, %arg8: memref<32x32xbf16, #tpu.memory_space<vmem>>, %arg9: memref<1x32xf32, #tpu.memory_space<vmem>>, %arg10: memref<32x64xbf16, #tpu.memory_space<vmem>>, %arg11: memref<1x64xf32, #tpu.memory_space<vmem>>, %arg12: memref<32x32xbf16, #tpu.memory_space<vmem>>, %arg13: memref<1x32xf32, #tpu.memory_space<vmem>>, %arg14: memref<32x64xbf16, #tpu.memory_space<vmem>>, %arg15: memref<1x64xf32, #tpu.memory_space<vmem>>, %arg16: memref<64x32xbf16, #tpu.memory_space<vmem>>, %arg17: memref<1x32xf32, #tpu.memory_space<vmem>>, %arg18: memref<3x32xf32, #tpu.memory_space<vmem>>, %arg19: memref<3x32xf32, #tpu.memory_space<vmem>>, %arg20: memref<16x32xf32, #tpu.memory_space<vmem>>) attributes {dimension_semantics = [], scalar_prefetch = 0 : i64, scratch_operands = 0 : i64, tpu.core_type = #tpu.core_type<tc>} {
    %c0 = arith.constant 0 : index
    %c0_0 = arith.constant 0 : index
    %0 = vector.load %arg0[%c0, %c0_0] : memref<16x32xf32, #tpu.memory_space<vmem>>, vector<16x32xf32>
    %c0_1 = arith.constant 0 : index
    %c0_2 = arith.constant 0 : index
    %1 = vector.load %arg1[%c0_1, %c0_2] : memref<16x32xf32, #tpu.memory_space<vmem>>, vector<16x32xf32>
    %c0_3 = arith.constant 0 : index
    %c0_4 = arith.constant 0 : index
    %2 = vector.load %arg2[%c0_3, %c0_4] : memref<16x16xf32, #tpu.memory_space<vmem>>, vector<16x16xf32>
    %c0_5 = arith.constant 0 : index
    %c0_6 = arith.constant 0 : index
    %3 = vector.load %arg3[%c0_5, %c0_6] : memref<16x16xf32, #tpu.memory_space<vmem>>, vector<16x16xf32>
    %c0_7 = arith.constant 0 : index
    %c0_8 = arith.constant 0 : index
    %4 = vector.load %arg18[%c0_7, %c0_8] : memref<3x32xf32, #tpu.memory_space<vmem>>, vector<3x32xf32>
    %c0_9 = arith.constant 0 : index
    %c0_10 = arith.constant 0 : index
    %5 = vector.load %arg19[%c0_9, %c0_10] : memref<3x32xf32, #tpu.memory_space<vmem>>, vector<3x32xf32>
    %6 = arith.truncf %0 : vector<16x32xf32> to vector<16x32xbf16>
    %c0_11 = arith.constant 0 : index
    %c0_12 = arith.constant 0 : index
    %7 = vector.load %arg4[%c0_11, %c0_12] : memref<32x96xbf16, #tpu.memory_space<vmem>>, vector<32x96xbf16>
    %cst = arith.constant dense<0.000000e+00> : vector<16x96xf32>
    %8 = tpu.matmul %6, %7, %cst {dimension_numbers = #tpu.dot_dimension_numbers<[1], [0], [0], [1], [0, 0, 1, 1], [], []>} : vector<16x32xbf16>, vector<32x96xbf16>, vector<16x96xf32> -> vector<16x96xf32>
    %c0_13 = arith.constant 0 : index
    %c0_14 = arith.constant 0 : index
    %9 = vector.load %arg5[%c0_13, %c0_14] : memref<1x96xf32, #tpu.memory_space<vmem>>, vector<1x96xf32>
    %10 = vector.broadcast %9 : vector<1x96xf32> to vector<16x96xf32>
    %11 = arith.addf %8, %10 : vector<16x96xf32>
    %12 = vector.extract_strided_slice %11 {offsets = [0, 0], sizes = [16, 32], strides = [1, 1]} : vector<16x96xf32> to vector<16x32xf32>
    %13 = vector.extract_strided_slice %11 {offsets = [0, 32], sizes = [16, 32], strides = [1, 1]} : vector<16x96xf32> to vector<16x32xf32>
    %14 = vector.extract_strided_slice %11 {offsets = [0, 64], sizes = [16, 32], strides = [1, 1]} : vector<16x96xf32> to vector<16x32xf32>
    %15 = vector.shape_cast %12 : vector<16x32xf32> to vector<16x4x8xf32>
    %16 = tpu.transpose %15, [1, 0, 2] : vector<16x4x8xf32> -> vector<4x16x8xf32>
    %17 = arith.truncf %16 : vector<4x16x8xf32> to vector<4x16x8xbf16>
    %18 = vector.shape_cast %13 : vector<16x32xf32> to vector<16x4x8xf32>
    %19 = tpu.transpose %18, [1, 0, 2] : vector<16x4x8xf32> -> vector<4x16x8xf32>
    %20 = arith.truncf %19 : vector<4x16x8xf32> to vector<4x16x8xbf16>
    %21 = vector.shape_cast %14 : vector<16x32xf32> to vector<16x4x8xf32>
    %22 = tpu.transpose %21, [1, 0, 2] : vector<16x4x8xf32> -> vector<4x16x8xf32>
    %23 = arith.truncf %22 : vector<4x16x8xf32> to vector<4x16x8xbf16>
    "tpu.trace_start"() <{level = 10 : i32, message = "hqd,hkd->hqk"}> : () -> ()
    %cst_15 = arith.constant dense<0.000000e+00> : vector<4x16x16xf32>
    %24 = tpu.matmul %17, %20, %cst_15 {dimension_numbers = #tpu.dot_dimension_numbers<[2], [2], [1], [1], [0, 0, 0, 1, 1, 1], [0], [0]>} : vector<4x16x8xbf16>, vector<4x16x8xbf16>, vector<4x16x16xf32> -> vector<4x16x16xf32>
    "tpu.trace_stop"() : () -> ()
    %cst_16 = arith.constant 0.353553385 : f32
    %25 = vector.broadcast %cst_16 : f32 to vector<4x16x16xf32>
    %26 = arith.mulf %24, %25 : vector<4x16x16xf32>
    %27 = vector.shape_cast %2 : vector<16x16xf32> to vector<1x16x16xf32>
    %28 = vector.broadcast %27 : vector<1x16x16xf32> to vector<4x16x16xf32>
    %29 = arith.addf %26, %28 : vector<4x16x16xf32>
    %cst_17 = arith.constant dense<0xFF800000> : vector<4x16xf32>
    %30 = vector.multi_reduction <maximumf>, %29, %cst_17 [2] : vector<4x16x16xf32> to vector<4x16xf32>
    %31 = vector.shape_cast %30 : vector<4x16xf32> to vector<4x16x1xf32>
    %32 = vector.broadcast %31 : vector<4x16x1xf32> to vector<4x16x16xf32>
    %33 = arith.subf %29, %32 : vector<4x16x16xf32>
    %34 = math.exp %33 : vector<4x16x16xf32>
    %cst_18 = arith.constant dense<0.000000e+00> : vector<4x16xf32>
    %35 = vector.multi_reduction <add>, %34, %cst_18 [2] : vector<4x16x16xf32> to vector<4x16xf32>
    %36 = vector.shape_cast %35 : vector<4x16xf32> to vector<4x16x1xf32>
    %37 = tpu.reciprocal %36 {approx = true} : vector<4x16x1xf32> -> vector<4x16x1xf32>
    %38 = vector.broadcast %37 : vector<4x16x1xf32> to vector<4x16x16xf32>
    %39 = arith.mulf %34, %38 : vector<4x16x16xf32>
    %40 = arith.truncf %39 : vector<4x16x16xf32> to vector<4x16x16xbf16>
    "tpu.trace_start"() <{level = 10 : i32, message = "hqk,hkd->hqd"}> : () -> ()
    %cst_19 = arith.constant dense<0.000000e+00> : vector<4x16x8xf32>
    %41 = tpu.matmul %40, %23, %cst_19 {dimension_numbers = #tpu.dot_dimension_numbers<[2], [1], [1], [2], [0, 0, 0, 1, 1, 2], [0], [0]>} : vector<4x16x16xbf16>, vector<4x16x8xbf16>, vector<4x16x8xf32> -> vector<4x16x8xf32>
    "tpu.trace_stop"() : () -> ()
    %42 = tpu.transpose %41, [1, 0, 2] : vector<4x16x8xf32> -> vector<16x4x8xf32>
    %43 = vector.shape_cast %42 : vector<16x4x8xf32> to vector<16x32xf32>
    %44 = arith.truncf %43 : vector<16x32xf32> to vector<16x32xbf16>
    %c0_20 = arith.constant 0 : index
    %c0_21 = arith.constant 0 : index
    %45 = vector.load %arg6[%c0_20, %c0_21] : memref<32x32xbf16, #tpu.memory_space<vmem>>, vector<32x32xbf16>
    %cst_22 = arith.constant dense<0.000000e+00> : vector<16x32xf32>
    %46 = tpu.matmul %44, %45, %cst_22 {dimension_numbers = #tpu.dot_dimension_numbers<[1], [0], [0], [1], [0, 0, 1, 1], [], []>} : vector<16x32xbf16>, vector<32x32xbf16>, vector<16x32xf32> -> vector<16x32xf32>
    %c0_23 = arith.constant 0 : index
    %c0_24 = arith.constant 0 : index
    %47 = vector.load %arg7[%c0_23, %c0_24] : memref<1x32xf32, #tpu.memory_space<vmem>>, vector<1x32xf32>
    %48 = vector.broadcast %47 : vector<1x32xf32> to vector<16x32xf32>
    %49 = arith.addf %46, %48 : vector<16x32xf32>
    %50 = vector.extract_strided_slice %4 {offsets = [0, 0], sizes = [1, 32], strides = [1, 1]} : vector<3x32xf32> to vector<1x32xf32>
    %51 = vector.extract_strided_slice %5 {offsets = [0, 0], sizes = [1, 32], strides = [1, 1]} : vector<3x32xf32> to vector<1x32xf32>
    %52 = arith.addf %0, %49 : vector<16x32xf32>
    %cst_25 = arith.constant dense<0.000000e+00> : vector<16xf32>
    %53 = vector.multi_reduction <add>, %52, %cst_25 [1] : vector<16x32xf32> to vector<16xf32>
    %54 = vector.shape_cast %53 : vector<16xf32> to vector<16x1xf32>
    %cst_26 = arith.constant 3.200000e+01 : f32
    %55 = vector.broadcast %cst_26 : f32 to vector<16x1xf32>
    %56 = arith.divf %54, %55 : vector<16x1xf32>
    %57 = vector.broadcast %56 : vector<16x1xf32> to vector<16x32xf32>
    %58 = arith.subf %52, %57 : vector<16x32xf32>
    %59 = arith.mulf %58, %58 : vector<16x32xf32>
    %cst_27 = arith.constant dense<0.000000e+00> : vector<16xf32>
    %60 = vector.multi_reduction <add>, %59, %cst_27 [1] : vector<16x32xf32> to vector<16xf32>
    %61 = vector.shape_cast %60 : vector<16xf32> to vector<16x1xf32>
    %cst_28 = arith.constant 3.200000e+01 : f32
    %62 = vector.broadcast %cst_28 : f32 to vector<16x1xf32>
    %63 = arith.divf %61, %62 : vector<16x1xf32>
    %cst_29 = arith.constant 9.99999974E-6 : f32
    %64 = vector.broadcast %cst_29 : f32 to vector<16x1xf32>
    %65 = arith.addf %63, %64 : vector<16x1xf32>
    %66 = math.rsqrt %65 : vector<16x1xf32>
    %67 = vector.broadcast %66 : vector<16x1xf32> to vector<16x32xf32>
    %68 = arith.mulf %58, %67 : vector<16x32xf32>
    %69 = vector.broadcast %50 : vector<1x32xf32> to vector<16x32xf32>
    %70 = arith.mulf %68, %69 : vector<16x32xf32>
    %71 = vector.broadcast %51 : vector<1x32xf32> to vector<16x32xf32>
    %72 = arith.addf %70, %71 : vector<16x32xf32>
    %73 = arith.truncf %72 : vector<16x32xf32> to vector<16x32xbf16>
    %c0_30 = arith.constant 0 : index
    %c0_31 = arith.constant 0 : index
    %74 = vector.load %arg8[%c0_30, %c0_31] : memref<32x32xbf16, #tpu.memory_space<vmem>>, vector<32x32xbf16>
    %cst_32 = arith.constant dense<0.000000e+00> : vector<16x32xf32>
    %75 = tpu.matmul %73, %74, %cst_32 {dimension_numbers = #tpu.dot_dimension_numbers<[1], [0], [0], [1], [0, 0, 1, 1], [], []>} : vector<16x32xbf16>, vector<32x32xbf16>, vector<16x32xf32> -> vector<16x32xf32>
    %c0_33 = arith.constant 0 : index
    %c0_34 = arith.constant 0 : index
    %76 = vector.load %arg9[%c0_33, %c0_34] : memref<1x32xf32, #tpu.memory_space<vmem>>, vector<1x32xf32>
    %77 = vector.broadcast %76 : vector<1x32xf32> to vector<16x32xf32>
    %78 = arith.addf %75, %77 : vector<16x32xf32>
    %79 = arith.truncf %1 : vector<16x32xf32> to vector<16x32xbf16>
    %c0_35 = arith.constant 0 : index
    %c0_36 = arith.constant 0 : index
    %80 = vector.load %arg10[%c0_35, %c0_36] : memref<32x64xbf16, #tpu.memory_space<vmem>>, vector<32x64xbf16>
    %cst_37 = arith.constant dense<0.000000e+00> : vector<16x64xf32>
    %81 = tpu.matmul %79, %80, %cst_37 {dimension_numbers = #tpu.dot_dimension_numbers<[1], [0], [0], [1], [0, 0, 1, 1], [], []>} : vector<16x32xbf16>, vector<32x64xbf16>, vector<16x64xf32> -> vector<16x64xf32>
    %c0_38 = arith.constant 0 : index
    %c0_39 = arith.constant 0 : index
    %82 = vector.load %arg11[%c0_38, %c0_39] : memref<1x64xf32, #tpu.memory_space<vmem>>, vector<1x64xf32>
    %83 = vector.broadcast %82 : vector<1x64xf32> to vector<16x64xf32>
    %84 = arith.addf %81, %83 : vector<16x64xf32>
    %85 = vector.extract_strided_slice %84 {offsets = [0, 0], sizes = [16, 32], strides = [1, 1]} : vector<16x64xf32> to vector<16x32xf32>
    %86 = vector.extract_strided_slice %84 {offsets = [0, 32], sizes = [16, 32], strides = [1, 1]} : vector<16x64xf32> to vector<16x32xf32>
    %87 = vector.shape_cast %78 : vector<16x32xf32> to vector<16x4x8xf32>
    %88 = tpu.transpose %87, [1, 0, 2] : vector<16x4x8xf32> -> vector<4x16x8xf32>
    %89 = arith.truncf %88 : vector<4x16x8xf32> to vector<4x16x8xbf16>
    %90 = vector.shape_cast %85 : vector<16x32xf32> to vector<16x4x8xf32>
    %91 = tpu.transpose %90, [1, 0, 2] : vector<16x4x8xf32> -> vector<4x16x8xf32>
    %92 = arith.truncf %91 : vector<4x16x8xf32> to vector<4x16x8xbf16>
    %93 = vector.shape_cast %86 : vector<16x32xf32> to vector<16x4x8xf32>
    %94 = tpu.transpose %93, [1, 0, 2] : vector<16x4x8xf32> -> vector<4x16x8xf32>
    %95 = arith.truncf %94 : vector<4x16x8xf32> to vector<4x16x8xbf16>
    "tpu.trace_start"() <{level = 10 : i32, message = "hqd,hkd->hqk"}> : () -> ()
    %cst_40 = arith.constant dense<0.000000e+00> : vector<4x16x16xf32>
    %96 = tpu.matmul %89, %92, %cst_40 {dimension_numbers = #tpu.dot_dimension_numbers<[2], [2], [1], [1], [0, 0, 0, 1, 1, 1], [0], [0]>} : vector<4x16x8xbf16>, vector<4x16x8xbf16>, vector<4x16x16xf32> -> vector<4x16x16xf32>
    "tpu.trace_stop"() : () -> ()
    %cst_41 = arith.constant 0.353553385 : f32
    %97 = vector.broadcast %cst_41 : f32 to vector<4x16x16xf32>
    %98 = arith.mulf %96, %97 : vector<4x16x16xf32>
    %99 = vector.shape_cast %3 : vector<16x16xf32> to vector<1x16x16xf32>
    %100 = vector.broadcast %99 : vector<1x16x16xf32> to vector<4x16x16xf32>
    %101 = arith.addf %98, %100 : vector<4x16x16xf32>
    %cst_42 = arith.constant dense<0xFF800000> : vector<4x16xf32>
    %102 = vector.multi_reduction <maximumf>, %101, %cst_42 [2] : vector<4x16x16xf32> to vector<4x16xf32>
    %103 = vector.shape_cast %102 : vector<4x16xf32> to vector<4x16x1xf32>
    %104 = vector.broadcast %103 : vector<4x16x1xf32> to vector<4x16x16xf32>
    %105 = arith.subf %101, %104 : vector<4x16x16xf32>
    %106 = math.exp %105 : vector<4x16x16xf32>
    %cst_43 = arith.constant dense<0.000000e+00> : vector<4x16xf32>
    %107 = vector.multi_reduction <add>, %106, %cst_43 [2] : vector<4x16x16xf32> to vector<4x16xf32>
    %108 = vector.shape_cast %107 : vector<4x16xf32> to vector<4x16x1xf32>
    %109 = tpu.reciprocal %108 {approx = true} : vector<4x16x1xf32> -> vector<4x16x1xf32>
    %110 = vector.broadcast %109 : vector<4x16x1xf32> to vector<4x16x16xf32>
    %111 = arith.mulf %106, %110 : vector<4x16x16xf32>
    %112 = arith.truncf %111 : vector<4x16x16xf32> to vector<4x16x16xbf16>
    "tpu.trace_start"() <{level = 10 : i32, message = "hqk,hkd->hqd"}> : () -> ()
    %cst_44 = arith.constant dense<0.000000e+00> : vector<4x16x8xf32>
    %113 = tpu.matmul %112, %95, %cst_44 {dimension_numbers = #tpu.dot_dimension_numbers<[2], [1], [1], [2], [0, 0, 0, 1, 1, 2], [0], [0]>} : vector<4x16x16xbf16>, vector<4x16x8xbf16>, vector<4x16x8xf32> -> vector<4x16x8xf32>
    "tpu.trace_stop"() : () -> ()
    %114 = tpu.transpose %113, [1, 0, 2] : vector<4x16x8xf32> -> vector<16x4x8xf32>
    %115 = vector.shape_cast %114 : vector<16x4x8xf32> to vector<16x32xf32>
    %116 = arith.truncf %115 : vector<16x32xf32> to vector<16x32xbf16>
    %c0_45 = arith.constant 0 : index
    %c0_46 = arith.constant 0 : index
    %117 = vector.load %arg12[%c0_45, %c0_46] : memref<32x32xbf16, #tpu.memory_space<vmem>>, vector<32x32xbf16>
    %cst_47 = arith.constant dense<0.000000e+00> : vector<16x32xf32>
    %118 = tpu.matmul %116, %117, %cst_47 {dimension_numbers = #tpu.dot_dimension_numbers<[1], [0], [0], [1], [0, 0, 1, 1], [], []>} : vector<16x32xbf16>, vector<32x32xbf16>, vector<16x32xf32> -> vector<16x32xf32>
    %c0_48 = arith.constant 0 : index
    %c0_49 = arith.constant 0 : index
    %119 = vector.load %arg13[%c0_48, %c0_49] : memref<1x32xf32, #tpu.memory_space<vmem>>, vector<1x32xf32>
    %120 = vector.broadcast %119 : vector<1x32xf32> to vector<16x32xf32>
    %121 = arith.addf %118, %120 : vector<16x32xf32>
    %122 = vector.extract_strided_slice %4 {offsets = [1, 0], sizes = [1, 32], strides = [1, 1]} : vector<3x32xf32> to vector<1x32xf32>
    %123 = vector.extract_strided_slice %5 {offsets = [1, 0], sizes = [1, 32], strides = [1, 1]} : vector<3x32xf32> to vector<1x32xf32>
    %124 = arith.addf %72, %121 : vector<16x32xf32>
    %cst_50 = arith.constant dense<0.000000e+00> : vector<16xf32>
    %125 = vector.multi_reduction <add>, %124, %cst_50 [1] : vector<16x32xf32> to vector<16xf32>
    %126 = vector.shape_cast %125 : vector<16xf32> to vector<16x1xf32>
    %cst_51 = arith.constant 3.200000e+01 : f32
    %127 = vector.broadcast %cst_51 : f32 to vector<16x1xf32>
    %128 = arith.divf %126, %127 : vector<16x1xf32>
    %129 = vector.broadcast %128 : vector<16x1xf32> to vector<16x32xf32>
    %130 = arith.subf %124, %129 : vector<16x32xf32>
    %131 = arith.mulf %130, %130 : vector<16x32xf32>
    %cst_52 = arith.constant dense<0.000000e+00> : vector<16xf32>
    %132 = vector.multi_reduction <add>, %131, %cst_52 [1] : vector<16x32xf32> to vector<16xf32>
    %133 = vector.shape_cast %132 : vector<16xf32> to vector<16x1xf32>
    %cst_53 = arith.constant 3.200000e+01 : f32
    %134 = vector.broadcast %cst_53 : f32 to vector<16x1xf32>
    %135 = arith.divf %133, %134 : vector<16x1xf32>
    %cst_54 = arith.constant 9.99999974E-6 : f32
    %136 = vector.broadcast %cst_54 : f32 to vector<16x1xf32>
    %137 = arith.addf %135, %136 : vector<16x1xf32>
    %138 = math.rsqrt %137 : vector<16x1xf32>
    %139 = vector.broadcast %138 : vector<16x1xf32> to vector<16x32xf32>
    %140 = arith.mulf %130, %139 : vector<16x32xf32>
    %141 = vector.broadcast %122 : vector<1x32xf32> to vector<16x32xf32>
    %142 = arith.mulf %140, %141 : vector<16x32xf32>
    %143 = vector.broadcast %123 : vector<1x32xf32> to vector<16x32xf32>
    %144 = arith.addf %142, %143 : vector<16x32xf32>
    %145 = arith.truncf %144 : vector<16x32xf32> to vector<16x32xbf16>
    %c0_55 = arith.constant 0 : index
    %c0_56 = arith.constant 0 : index
    %146 = vector.load %arg14[%c0_55, %c0_56] : memref<32x64xbf16, #tpu.memory_space<vmem>>, vector<32x64xbf16>
    %cst_57 = arith.constant dense<0.000000e+00> : vector<16x64xf32>
    %147 = tpu.matmul %145, %146, %cst_57 {dimension_numbers = #tpu.dot_dimension_numbers<[1], [0], [0], [1], [0, 0, 1, 1], [], []>} : vector<16x32xbf16>, vector<32x64xbf16>, vector<16x64xf32> -> vector<16x64xf32>
    %c0_58 = arith.constant 0 : index
    %c0_59 = arith.constant 0 : index
    %148 = vector.load %arg15[%c0_58, %c0_59] : memref<1x64xf32, #tpu.memory_space<vmem>>, vector<1x64xf32>
    %149 = vector.broadcast %148 : vector<1x64xf32> to vector<16x64xf32>
    %150 = arith.addf %147, %149 : vector<16x64xf32>
    %cst_60 = arith.constant 0.000000e+00 : f32
    %151 = vector.broadcast %cst_60 : f32 to vector<16x64xf32>
    %152 = arith.maximumf %150, %151 : vector<16x64xf32>
    %153 = arith.truncf %152 : vector<16x64xf32> to vector<16x64xbf16>
    %c0_61 = arith.constant 0 : index
    %c0_62 = arith.constant 0 : index
    %154 = vector.load %arg16[%c0_61, %c0_62] : memref<64x32xbf16, #tpu.memory_space<vmem>>, vector<64x32xbf16>
    %cst_63 = arith.constant dense<0.000000e+00> : vector<16x32xf32>
    %155 = tpu.matmul %153, %154, %cst_63 {dimension_numbers = #tpu.dot_dimension_numbers<[1], [0], [0], [1], [0, 0, 1, 1], [], []>} : vector<16x64xbf16>, vector<64x32xbf16>, vector<16x32xf32> -> vector<16x32xf32>
    %c0_64 = arith.constant 0 : index
    %c0_65 = arith.constant 0 : index
    %156 = vector.load %arg17[%c0_64, %c0_65] : memref<1x32xf32, #tpu.memory_space<vmem>>, vector<1x32xf32>
    %157 = vector.broadcast %156 : vector<1x32xf32> to vector<16x32xf32>
    %158 = arith.addf %155, %157 : vector<16x32xf32>
    %159 = vector.extract_strided_slice %4 {offsets = [2, 0], sizes = [1, 32], strides = [1, 1]} : vector<3x32xf32> to vector<1x32xf32>
    %160 = vector.extract_strided_slice %5 {offsets = [2, 0], sizes = [1, 32], strides = [1, 1]} : vector<3x32xf32> to vector<1x32xf32>
    %161 = arith.addf %144, %158 : vector<16x32xf32>
    %cst_66 = arith.constant dense<0.000000e+00> : vector<16xf32>
    %162 = vector.multi_reduction <add>, %161, %cst_66 [1] : vector<16x32xf32> to vector<16xf32>
    %163 = vector.shape_cast %162 : vector<16xf32> to vector<16x1xf32>
    %cst_67 = arith.constant 3.200000e+01 : f32
    %164 = vector.broadcast %cst_67 : f32 to vector<16x1xf32>
    %165 = arith.divf %163, %164 : vector<16x1xf32>
    %166 = vector.broadcast %165 : vector<16x1xf32> to vector<16x32xf32>
    %167 = arith.subf %161, %166 : vector<16x32xf32>
    %168 = arith.mulf %167, %167 : vector<16x32xf32>
    %cst_68 = arith.constant dense<0.000000e+00> : vector<16xf32>
    %169 = vector.multi_reduction <add>, %168, %cst_68 [1] : vector<16x32xf32> to vector<16xf32>
    %170 = vector.shape_cast %169 : vector<16xf32> to vector<16x1xf32>
    %cst_69 = arith.constant 3.200000e+01 : f32
    %171 = vector.broadcast %cst_69 : f32 to vector<16x1xf32>
    %172 = arith.divf %170, %171 : vector<16x1xf32>
    %cst_70 = arith.constant 9.99999974E-6 : f32
    %173 = vector.broadcast %cst_70 : f32 to vector<16x1xf32>
    %174 = arith.addf %172, %173 : vector<16x1xf32>
    %175 = math.rsqrt %174 : vector<16x1xf32>
    %176 = vector.broadcast %175 : vector<16x1xf32> to vector<16x32xf32>
    %177 = arith.mulf %167, %176 : vector<16x32xf32>
    %178 = vector.broadcast %159 : vector<1x32xf32> to vector<16x32xf32>
    %179 = arith.mulf %177, %178 : vector<16x32xf32>
    %180 = vector.broadcast %160 : vector<1x32xf32> to vector<16x32xf32>
    %181 = arith.addf %179, %180 : vector<16x32xf32>
    %c0_71 = arith.constant 0 : index
    %c0_72 = arith.constant 0 : index
    %182 = vector.load %arg20[%c0_71, %c0_72] : memref<16x32xf32, #tpu.memory_space<vmem>>, vector<16x32xf32>
    tpu.vector_store %arg20[%c0_71, %c0_72], %181 {strides = array<i32>} : memref<16x32xf32, #tpu.memory_space<vmem>>, vector<16x32xf32>,
    return
  }
}

</mosaic_0001>

<bundles_post_ra>
// kernel: decoder_layer_forward.1
= control target key start
LH: loop header
LB: loop body
LE: loop exit
PB: predicated region body
PF: predicated region fallthrough
CT: control target
= control target key end

     0   :  { %s5449_s0 = inlined_call_operand.vmem [shape: f32[16,32], index: 0, kind: input, shape index: {}]   ;;  %s5450_s1 = inlined_call_operand.vmem [shape: f32[16,32], index: 1, kind: input, shape index: {}]   ;;  %s5451_s2 = inlined_call_operand.vmem [shape: f32[16,16], index: 2, kind: input, shape index: {}]   ;;  %s5452_s3 = inlined_call_operand.vmem [shape: f32[16,16], index: 3, kind: input, shape index: {}]   ;;  %s5453_s4 = inlined_call_operand.vmem [shape: bf16[32,96], index: 4, kind: input, shape index: {}]   ;;  %s5454_s5 = inlined_call_operand.vmem [shape: f32[1,96], index: 5, kind: input, shape index: {}]   ;;  %s5455_s6 = inlined_call_operand.vmem [shape: bf16[32,32], index: 6, kind: input, shape index: {}]   ;;  %s5456_s7 = inlined_call_operand.vmem [shape: f32[1,32], index: 7, kind: input, shape index: {}]   ;;  %s5457_s8 = inlined_call_operand.vmem [shape: bf16[32,32], index: 8, kind: input, shape index: {}]   ;;  %s5458_s9 = inlined_call_operand.vmem [shape: f32[1,32], index: 9, kind: input, shape index: {}]   ;;  %s5459_s10 = inlined_call_operand.vmem [shape: bf16[32,64], index: 10, kind: input, shape index: {}]   ;;  %s5460_s11 = inlined_call_operand.vmem [shape: f32[1,64], index: 11, kind: input, shape index: {}]   ;;  %s5461_s12 = inlined_call_operand.vmem [shape: bf16[32,32], index: 12, kind: input, shape index: {}]   ;;  %s5462_s13 = inlined_call_operand.vmem [shape: f32[1,32], index: 13, kind: input, shape index: {}]   ;;  %s5463_s14 = inlined_call_operand.vmem [shape: bf16[32,64], index: 14, kind: input, shape index: {}]   ;;  %s5464_s15 = inlined_call_operand.vmem [shape: f32[1,64], index: 15, kind: input, shape index: {}]   ;;  %s5465_s16 = inlined_call_operand.vmem [shape: bf16[64,32], index: 16, kind: input, shape index: {}]   ;;  %s5466_s17 = inlined_call_operand.vmem [shape: f32[1,32], index: 17, kind: input, shape index: {}]   ;;  %s5467_s18 = inlined_call_operand.vmem [shape: f32[3,32], index: 18, kind: input, shape index: {}]   ;;  %s5468_s19 = inlined_call_operand.vmem [shape: f32[3,32], index: 19, kind: input, shape index: {}]   ;;  %s5469_s20 = inlined_call_operand.hbm [shape: f32[16,32], index: 20, kind: output, shape index: {}]  }
   0x1   :  { %5475 = sst [smem:[#allocation5_spill]] %s5449_s0 }
   0x2   :  { %5476 = sst [smem:[#allocation6_spill]] %s5450_s1 }
   0x3   :  { %5477 = sst [smem:[#allocation7_spill]] %s5451_s2 }
   0x4   :  { %5478 = sst [smem:[#allocation8_spill]] %s5452_s3 }
   0x5   :  { %5479 = sst [smem:[#allocation9_spill]] %s5453_s4 }
   0x6   :  { %s5480_s23 = sld [smem:[#allocation9_spill]]  ;;  %v4504_v1 = vmov 0.0   ;;  %vm4505_vm0 = vmmov 0   ;;  %s5481_s26 = sld [smem:[#allocation5_spill]]  ;;  %vm101_vm1 = vcmask 261120  }
   0x7   :  { %4184 = vmatprep.subr.bf16.mxu1 %v4504_v1  ;;  %4198 = vmatprep.subr.bf16.mxu0 %v4504_v1 }
   0x8   :  { %4188 = vmatprep.mubr.msk.bf16.mxu1 %vm4505_vm0, %v4504_v1  ;;  %4200 = vmatprep.mubr.msk.bf16.mxu0 %vm4505_vm0, %v4504_v1 }
   0xc   :  { %v4384_v0 = vld [vmem:[%s5480_s23] sm:$0xff]   ;;  %v4385_v2 = vld [vmem:[%s5480_s23 + $0x8] sm:$0xff]  }
   0xd   :  { %4185 = vmatpush3.bf16.msra.mxu1 %v4384_v0  ;;  %v67_v3 = vld [vmem:[%s5481_s26] sm:$0xff]  ;;  %v68_v4 = vld [vmem:[%s5481_s26 + $0x8] sm:$0xff] }
   0xe   :  { %4186 = vmatprep.subr.bf16.mxu1 %v4504_v1  ;;  %v77_v5 = vpack.c.bf16 %v68_v4, %v67_v3 }
  0x11   :  { %4187 = vmatpush3.bf16.msra.mxu1 %v4385_v2 }
  0x12   :  { %4192 = vmatprep.subr.bf16.mxu1 %v4504_v1 }
  0x14   :  { %4189 = vmatmul.mubr.msk.bf16.vlgmr.msra.gmra.mrb[0].mxu1 %vm101_vm1, %v77_v5 }
  0x15   :  { %4194 = vmatprep.mubr.msk.bf16.mxu1 %vm4505_vm0, %v4504_v1 }
  0x16   :  { %25 = vsyncpa [#allocation3], 0  ;;  %v4051_v6 = vld [vmem:[%s5454_s5] ss:$0 sm:$0xff]  ;;  %s4506_s30 = smov 112   ;;  %s4507_s0 = smov 120   ;;  %v171_v21 = vlaneseq }
  0x17   :  { %s4508_s5 = smov 104   ;;  %s4509_s21 = smov 96   ;;  %v4510_v19 = vmov 1983009808   ;;  %v4511_v24 = vmov 1934713408  }
  0x18   :  { %v169_v20 = vunpack.c.l.s4 %v4510_v19  ;;  %v4693_v23 = vshrl.u32 %v171_v21, 7  ;;  %v201_v25 = vunpack.c.l.s4 %v4511_v24  ;;  %vm1042_vm2 = vcmask 64512   ;;  %s5482_s23 = sld [smem:[#allocation7_spill]]  ;;  %s4512_s25 = smov 64  }
  0x19   :  { %vm1247_vm3 = vcmask 130048   ;;  %s4514_s29 = smov 8   ;;  %s4515_s1 = smov 24   ;;  %vm1816_vm4 = vcmask 195584   ;;  %vm3948_vm5 = vcmask 523264  }
  0x1a   :  { %v170_v22 = vunpack.c.0.s8 %v169_v20  ;;  %v202_v33 = vunpack.c.0.s8 %v201_v25  ;;  %s5483_s24 = sld [smem:[#allocation6_spill]] }
  0x1c   :  { %v4700_v28 = vsub.s32 %v170_v22, %v4693_v23  ;;  %v4721_v43 = vsub.s32 %v202_v33, %v4693_v23 }
  0xe7   :  { %v139_v7 = vpop.f32.mrb[0].mxu1 }
  0xe8   :  { %v4649_v8 = vadd.f32 %v4051_v6, %v139_v7  ;;  %v4190_v9 = vpop.f32.mrb[1].mxu1 }
  0xe9   :  { %v142_v10 = vpop.f32.mrb[2].mxu1 }
  0xea   :  { %154 = vrot.lane.b32.xlu1 %v4649_v8, %s4506_s30  ;;  %148 = vrot.lane.b32.xlu0 %v4649_v8, %s4507_s0  ;;  %v4191_v11 = vpop.f32.mrb[3].mxu1  ;;  %v4655_v12 = vadd.f32 %v4051_v6, %v142_v10 }
  0xee   :  { %156 = vrot.lane.b32.xlu1 %v4655_v12, %s4506_s30  ;;  %150 = vrot.lane.b32.xlu0 %v4655_v12, %s4507_s0 }
  0xf2   :  { %162 = vrot.lane.b32.xlu1 %v4655_v12, %s4508_s5  ;;  %160 = vrot.lane.b32.xlu0 %v4649_v8, %s4508_s5 }
  0xf6   :  { %444 = vrot.lane.b32.xlu1 %v4655_v12, %s4509_s21  ;;  %442 = vrot.lane.b32.xlu0 %v4649_v8, %s4509_s21 }
 0x15c   :  { %v4669_v13 = vpop.permute.xlu1 %154  ;;  %v4671_v14 = vpop.permute.xlu0 %148 }
 0x15d   :  { %446 = vrot.lane.b32.xlu0 %v4671_v14, %s4509_s21  ;;  %v166_v35 = vcombine.low %v4649_v8, %v4669_v13  ;;  %v167_v36 = vcombine.high %v4649_v8, %v4669_v13 }
 0x15f   :  { %v174_v46 = vrot.slane %v166_v35, %v4700_v28  ;;  %v181_v47 = vrot.slane %v167_v36, %v4700_v28 }
 0x160   :  { %v4675_v15 = vpop.permute.xlu0 %150  ;;  %v4681_v16 = vpop.permute.xlu1 %156 }
 0x161   :  { %450 = vrot.lane.b32.xlu0 %v4669_v13, %s4509_s21  ;;  %448 = vrot.lane.b32.xlu1 %v4675_v15, %s4509_s21  ;;  %v234_v29 = vcombine.low %v4655_v12, %v4681_v16  ;;  %v235_v30 = vcombine.high %v4655_v12, %v4681_v16 }
 0x163   :  { %v242_v38 = vrot.slane %v234_v29, %v4700_v28  ;;  %v249_v40 = vrot.slane %v235_v30, %v4700_v28 }
 0x164   :  { %v4683_v17 = vpop.permute.xlu0 %160  ;;  %v4689_v18 = vpop.permute.xlu1 %162 }
 0x165   :  { %452 = vrot.lane.b32.xlu1 %v4681_v16, %s4509_s21  ;;  %454 = vrot.lane.b32.xlu0 %v4683_v17, %s4509_s21  ;;  %v250_v26 = vcombine.low %v4675_v15, %v4689_v18  ;;  %v251_v27 = vcombine.high %v4675_v15, %v4689_v18  ;;  %v182_v31 = vcombine.low %v4671_v14, %v4683_v17 }
 0x166   :  { %v183_v32 = vcombine.high %v4671_v14, %v4683_v17 }
 0x167   :  { %v258_v34 = vrot.slane %v250_v26, %v4700_v28  ;;  %v265_v37 = vrot.slane %v251_v27, %v4700_v28  ;;  %v190_v41 = vrot.slane %v182_v31, %v4700_v28 }
 0x168   :  { %v443_v39 = vpop.permute.xlu0 %442  ;;  %v197_v42 = vrot.slane %v183_v32, %v4700_v28  ;;  %v445_v50 = vpop.permute.xlu1 %444 }
 0x169   :  { %456 = vrot.lane.b32.xlu1 %v4689_v18, %s4509_s21  ;;  %v266_v44 = vcombine.low %v242_v38, %v258_v34  ;;  %v267_v45 = vcombine.high %v242_v38, %v258_v34  ;;  %v282_v48 = vcombine.low %v249_v40, %v265_v37  ;;  %v283_v49 = vcombine.high %v249_v40, %v265_v37 }
 0x16a   :  { %v198_v52 = vcombine.low %v174_v46, %v190_v41  ;;  %v199_v53 = vcombine.high %v174_v46, %v190_v41  ;;  %v214_v54 = vcombine.low %v181_v47, %v197_v42  ;;  %v215_v55 = vcombine.high %v181_v47, %v197_v42 }
 0x16b   :  { %v274_v56 = vrot.slane %v266_v44, %v4721_v43  ;;  %v281_v57 = vrot.slane %v267_v45, %v4721_v43  ;;  %v290_v58 = vrot.slane %v282_v48, %v4721_v43  ;;  %v297_v59 = vrot.slane %v283_v49, %v4721_v43 }
 0x16c   :  { %v206_v62 = vrot.slane %v198_v52, %v4721_v43  ;;  %v213_v63 = vrot.slane %v199_v53, %v4721_v43  ;;  %v4732_v0 = vrot.slane %v214_v54, %v4721_v43  ;;  %v4735_v2 = vrot.slane %v215_v55, %v4721_v43 }
 0x16d   :  { %v370_v3 = vcombine.low %v274_v56, %v281_v57  ;;  %v4057_v4 = vcombine.high %v274_v56, %v281_v57  ;;  %v386_v5 = vcombine.low %v290_v58, %v297_v59  ;;  %v4058_v6 = vcombine.high %v290_v58, %v297_v59 }
 0x16e   :  { %v302_v11 = vcombine.low %v206_v62, %v213_v63  ;;  %v4055_v19 = vcombine.high %v206_v62, %v213_v63  ;;  %v318_v20 = vcombine.low %v4732_v0, %v4735_v2  ;;  %v4056_v21 = vcombine.high %v4732_v0, %v4735_v2 }
 0x16f   :  { %v4742_v24 = vrot.slane %v370_v3, %v4700_v28  ;;  %v4745_v25 = vrot.slane %v4057_v4, %v4700_v28  ;;  %v4748_v29 = vrot.slane %v386_v5, %v4700_v28  ;;  %v4751_v30 = vrot.slane %v4058_v6, %v4700_v28 }
 0x170   :  { %v4758_v38 = vrot.slane %v302_v11, %v4700_v28 }
 0x1cf   :  { %v447_v51 = vpop.permute.xlu0 %446 }
 0x1d3   :  { %v449_v60 = vpop.permute.xlu1 %448  ;;  %v451_v61 = vpop.permute.xlu0 %450 }
 0x1d4   :  { %v466_v7 = vcombine.low %v443_v39, %v451_v61  ;;  %v467_v9 = vcombine.high %v443_v39, %v451_v61  ;;  %v4761_v39 = vrot.slane %v4055_v19, %v4700_v28 }
 0x1d6   :  { %v474_v33 = vrot.slane %v466_v7, %v4700_v28  ;;  %v481_v34 = vrot.slane %v467_v9, %v4700_v28 }
 0x1d7   :  { %v453_v10 = vpop.permute.xlu1 %452  ;;  %v455_v22 = vpop.permute.xlu0 %454 }
 0x1d8   :  { %v482_v26 = vcombine.low %v447_v51, %v455_v22  ;;  %v483_v27 = vcombine.high %v447_v51, %v455_v22  ;;  %v534_v31 = vcombine.low %v445_v50, %v453_v10  ;;  %v535_v32 = vcombine.high %v445_v50, %v453_v10 }
 0x1d9   :  { %v325_v22 = vrot.slane %v318_v20, %v4700_v28 }
 0x1da   :  { %v490_v35 = vrot.slane %v482_v26, %v4700_v28  ;;  %v497_v36 = vrot.slane %v483_v27, %v4700_v28  ;;  %v542_v47 = vrot.slane %v534_v31, %v4700_v28  ;;  %v549_v48 = vrot.slane %v535_v32, %v4700_v28 }
 0x1db   :  { %v457_v37 = vpop.permute.xlu1 %456  ;;  %v333_v26 = vrot.slane %v4056_v21, %v4700_v28  ;;  %v402_v21 = vcombine.low %v4742_v24, %v4745_v25 }
 0x1dc   :  { %v550_v40 = vcombine.low %v449_v60, %v457_v37  ;;  %v551_v41 = vcombine.high %v449_v60, %v457_v37  ;;  %v498_v42 = vcombine.low %v474_v33, %v490_v35  ;;  %v499_v44 = vcombine.high %v474_v33, %v490_v35 }
 0x1dd   :  { %v514_v45 = vcombine.low %v481_v34, %v497_v36  ;;  %v515_v46 = vcombine.high %v481_v34, %v497_v36 }
 0x1de   :  { %v558_v49 = vrot.slane %v550_v40, %v4700_v28  ;;  %v565_v50 = vrot.slane %v551_v41, %v4700_v28  ;;  %v506_v51 = vrot.slane %v498_v42, %v4721_v43  ;;  %v513_v52 = vrot.slane %v499_v44, %v4721_v43 }
 0x1df   :  { %v522_v53 = vrot.slane %v514_v45, %v4721_v43  ;;  %v529_v54 = vrot.slane %v515_v46, %v4721_v43  ;;  %v418_v44 = vcombine.low %v4748_v29, %v4751_v30  ;;  %v334_v45 = vcombine.low %v4758_v38, %v4761_v39 }
 0x1e0   :  { %v566_v55 = vcombine.low %v542_v47, %v558_v49  ;;  %v567_v56 = vcombine.high %v542_v47, %v558_v49  ;;  %v582_v57 = vcombine.low %v549_v48, %v565_v50  ;;  %v583_v58 = vcombine.high %v549_v48, %v565_v50 }
 0x1e1   :  { %v602_v59 = vcombine.low %v506_v51, %v513_v52  ;;  %v4059_v60 = vcombine.high %v506_v51, %v513_v52  ;;  %v618_v61 = vcombine.low %v522_v53, %v529_v54  ;;  %v4060_v62 = vcombine.high %v522_v53, %v529_v54 }
 0x1e2   :  { %v574_v63 = vrot.slane %v566_v55, %v4721_v43  ;;  %v581_v0 = vrot.slane %v567_v56, %v4721_v43  ;;  %v590_v2 = vrot.slane %v582_v57, %v4721_v43  ;;  %v597_v3 = vrot.slane %v583_v58, %v4721_v43 }
 0x1e3   :  { %v609_v4 = vrot.slane %v602_v59, %v4700_v28  ;;  %v617_v5 = vrot.slane %v4059_v60, %v4700_v28  ;;  %v625_v6 = vrot.slane %v618_v61, %v4700_v28  ;;  %v633_v7 = vrot.slane %v4060_v62, %v4700_v28 }
 0x1e4   :  { %v670_v9 = vcombine.low %v574_v63, %v581_v0  ;;  %v4061_v10 = vcombine.high %v574_v63, %v581_v0  ;;  %v686_v11 = vcombine.low %v590_v2, %v597_v3  ;;  %v4062_v19 = vcombine.high %v590_v2, %v597_v3 }
 0x1e5   :  { %v634_v27 = vcombine.low %v609_v4, %v617_v5  ;;  %v650_v31 = vcombine.low %v625_v6, %v633_v7  ;;  %v350_v46 = vcombine.low %v325_v22, %v333_v26  ;;  %v635_v49 = vcombine.high %v609_v4, %v617_v5 }
 0x1e6   :  { %v677_v32 = vrot.slane %v670_v9, %v4700_v28  ;;  %v685_v33 = vrot.slane %v4061_v10, %v4700_v28  ;;  %v693_v34 = vrot.slane %v686_v11, %v4700_v28  ;;  %v701_v35 = vrot.slane %v4062_v19, %v4700_v28 }
 0x1e7   :  { %v642_v36 = vrot.slane %v634_v27, %v4721_v43  ;;  %v658_v37 = vrot.slane %v650_v31, %v4721_v43  ;;  %v651_v50 = vcombine.high %v625_v6, %v633_v7  ;;  %v342_v57 = vrot.slane %v334_v45, %v4721_v43  ;;  %v71_v45 = vld [vmem:[%s5482_s23] sm:$0xff] }
 0x1e8   :  { %v702_v40 = vcombine.low %v677_v32, %v685_v33  ;;  %v718_v41 = vcombine.low %v693_v34, %v701_v35  ;;  %v703_v42 = vcombine.high %v677_v32, %v685_v33  ;;  %v719_v20 = vcombine.high %v693_v34, %v701_v35 }
 0x1e9   :  { %v666_v51 = vcombine.low %v642_v36, %v658_v37  ;;  %v667_v52 = vcombine.high %v642_v36, %v658_v37  ;;  %v358_v58 = vrot.slane %v350_v46, %v4721_v43  ;;  %v410_v59 = vrot.slane %v402_v21, %v4721_v43 }
 0x1ea   :  { %v710_v47 = vrot.slane %v702_v40, %v4721_v43  ;;  %v726_v48 = vrot.slane %v718_v41, %v4721_v43  ;;  %v717_v55 = vrot.slane %v703_v42, %v4721_v43  ;;  %v733_v56 = vrot.slane %v719_v20, %v4721_v43 }
 0x1eb   :  { %v426_v60 = vrot.slane %v418_v44, %v4721_v43  ;;  %v649_v63 = vrot.slane %v635_v49, %v4721_v43  ;;  %v665_v0 = vrot.slane %v651_v50, %v4721_v43  ;;  %v403_v2 = vcombine.high %v4742_v24, %v4745_v25 }
 0x1ec   :  { %v734_v53 = vcombine.low %v710_v47, %v726_v48  ;;  %v735_v54 = vcombine.high %v710_v47, %v726_v48  ;;  %v419_v3 = vcombine.high %v4748_v29, %v4751_v30  ;;  %v335_v4 = vcombine.high %v4758_v38, %v4761_v39 }
 0x1ed   :  { %v351_v5 = vcombine.high %v325_v22, %v333_v26  ;;  %v736_v9 = vcombine.low %v717_v55, %v733_v56  ;;  %v737_v10 = vcombine.high %v717_v55, %v733_v56  ;;  %v366_v11 = vcombine.low %v342_v57, %v358_v58 }
 0x1ee   :  { %v738_v61 = vpack.c.bf16 %v734_v53, %v666_v51  ;;  %v739_v62 = vpack.c.bf16 %v735_v54, %v667_v52  ;;  %v434_v19 = vcombine.low %v410_v59, %v426_v60  ;;  %v435_v27 = vcombine.high %v410_v59, %v426_v60  ;;  %v72_v52 = vld [vmem:[%s5482_s23 + $0x8] sm:$0xff] }
 0x1ef   :  { %v367_v31 = vcombine.high %v342_v57, %v358_v58  ;;  %v668_v24 = vcombine.low %v649_v63, %v665_v0  ;;  %v669_v25 = vcombine.high %v649_v63, %v665_v0  ;;  %v349_v38 = vrot.slane %v335_v4, %v4721_v43 }
 0x1f0   :  { %v1047_v6 = vsel %vm1042_vm2, %v738_v61, 0  ;;  %v1094_v7 = vsel %vm1042_vm2, %v739_v62, 0  ;;  %v365_v39 = vrot.slane %v351_v5, %v4721_v43  ;;  %v438_v22 = vpack.c.bf16 %v434_v19, %v366_v11 }
 0x1f1   :  { %4193 = vmatpush3.bf16.xpose.msra.mxu1 %v1047_v6  ;;  %4199 = vmatpush3.bf16.xpose.msra.mxu0 %v1094_v7  ;;  %v740_v29 = vpack.c.bf16 %v736_v9, %v668_v24  ;;  %v741_v30 = vpack.c.bf16 %v737_v10, %v669_v25  ;;  %v439_v26 = vpack.c.bf16 %v435_v27, %v367_v31 }
 0x1f2   :  { %4204 = vmatprep.subr.bf16.mxu1 %v4504_v1  ;;  %4210 = vmatprep.subr.bf16.mxu0 %v4504_v1  ;;  %v417_v32 = vrot.slane %v403_v2, %v4721_v43  ;;  %v433_v33 = vrot.slane %v419_v3, %v4721_v43  ;;  %v368_v36 = vcombine.low %v349_v38, %v365_v39 }
 0x1f3   :  { %v1141_v34 = vsel %vm1042_vm2, %v740_v29, 0  ;;  %v1188_v35 = vsel %vm1042_vm2, %v741_v30, 0  ;;  %v369_v40 = vcombine.high %v349_v38, %v365_v39 }
 0x1f4   :  { %v436_v37 = vcombine.low %v417_v32, %v433_v33  ;;  %v437_v41 = vcombine.high %v417_v32, %v433_v33 }
 0x1f6   :  { %v440_v42 = vpack.c.bf16 %v436_v37, %v368_v36  ;;  %v441_v20 = vpack.c.bf16 %v437_v41, %v369_v40 }
 0x1f8   :  { %4195 = vmatmul.mubr.msk.bf16.vlgmr.msra.gmra.mrb[4].mxu1 %vm1042_vm2, %v438_v22  ;;  %4201 = vmatmul.mubr.msk.bf16.vlgmr.msra.gmra.mrb[0].mxu0 %vm1042_vm2, %v439_v26 }
 0x1f9   :  { %4205 = vmatpush3.bf16.xpose.msra.mxu1 %v1141_v34  ;;  %4211 = vmatpush3.bf16.xpose.msra.mxu0 %v1188_v35 }
 0x1fa   :  { %4206 = vmatprep.mubr.msk.bf16.mxu1 %vm4505_vm0, %v4504_v1  ;;  %4212 = vmatprep.mubr.msk.bf16.mxu0 %vm4505_vm0, %v4504_v1 }
 0x1fb   :  { %4216 = vmatprep.subr.bf16.mxu1 %v4504_v1  ;;  %4222 = vmatprep.subr.bf16.mxu0 %v4504_v1 }
 0x200   :  { %4207 = vmatmul.mubr.msk.bf16.vlgmr.msra.gmra.mrb[8].mxu1 %vm1042_vm2, %v440_v42  ;;  %4213 = vmatmul.mubr.msk.bf16.vlgmr.msra.gmra.mrb[4].mxu0 %vm1042_vm2, %v441_v20 }
 0x201   :  { %4218 = vmatprep.mubr.msk.bf16.mxu1 %vm4505_vm0, %v4504_v1  ;;  %4224 = vmatprep.mubr.msk.bf16.mxu0 %vm4505_vm0, %v4504_v1 }
 0x2cb   :  { %v1083_v21 = vpop.f32.mrb[4].mxu1  ;;  %v1130_v44 = vpop.f32.mrb[0].mxu0 }
 0x2cc   :  { %v1231_v46 = vmul.f32 0.35355338, %v1083_v21  ;;  %v1233_v47 = vmul.f32 0.35355338, %v1130_v44  ;;  %v4196_v48 = vpop.f32.mrb[5].mxu1  ;;  %v4202_v49 = vpop.f32.mrb[1].mxu0 }
 0x2cd   :  { %v1086_v50 = vpop.f32.mrb[6].mxu1  ;;  %v1133_v51 = vpop.f32.mrb[2].mxu0 }
 0x2ce   :  { %v1232_v53 = vmul.f32 0.35355338, %v1086_v50  ;;  %v4197_v54 = vpop.f32.mrb[7].mxu1  ;;  %v4203_v55 = vpop.f32.mrb[3].mxu0  ;;  %v1239_v56 = vadd.f32 %v1231_v46, %v71_v45  ;;  %v1234_v57 = vmul.f32 0.35355338, %v1133_v51  ;;  %v1241_v58 = vadd.f32 %v1233_v47, %v71_v45 }
 0x2d0   :  { %v1248_v59 = vsel %vm1247_vm3, %v1239_v56, -inf  ;;  %v1240_v60 = vadd.f32 %v1232_v53, %v72_v52  ;;  %v1254_v0 = vsel %vm1247_vm3, %v1241_v58, -inf  ;;  %v1242_v2 = vadd.f32 %v1234_v57, %v72_v52 }
 0x2d1   :  { %1249 = vmax.xlane.f32.xlu0 %v1248_v59 }
 0x2d2   :  { %v1251_v61 = vsel %vm1247_vm3, %v1240_v60, -inf  ;;  %v1257_v31 = vsel %vm1247_vm3, %v1242_v2, -inf }
 0x2d3   :  { %v1224_v62 = vpop.f32.mrb[4].mxu0  ;;  %1252 = vmax.xlane.f32.xlu1 %v1251_v61  ;;  %v1177_v63 = vpop.f32.mrb[8].mxu1 }
 0x2d4   :  { %v1237_v3 = vmul.f32 0.35355338, %v1224_v62  ;;  %v1235_v4 = vmul.f32 0.35355338, %v1177_v63  ;;  %v4208_v5 = vpop.f32.mrb[9].mxu1  ;;  %v4214_v6 = vpop.f32.mrb[5].mxu0 }
 0x2d5   :  { %v1227_v7 = vpop.f32.mrb[6].mxu0  ;;  %1255 = vmax.xlane.f32.xlu0 %v1254_v0  ;;  %v1180_v9 = vpop.f32.mrb[10].mxu1 }
 0x2d6   :  { %v1236_v10 = vmul.f32 0.35355338, %v1180_v9  ;;  %v4209_v11 = vpop.f32.mrb[11].mxu1  ;;  %v4215_v19 = vpop.f32.mrb[7].mxu0  ;;  %v1243_v27 = vadd.f32 %v1235_v4, %v71_v45  ;;  %v1238_v24 = vmul.f32 0.35355338, %v1227_v7  ;;  %v1245_v29 = vadd.f32 %v1237_v3, %v71_v45 }
 0x2d8   :  { %v1260_v25 = vsel %vm1247_vm3, %v1243_v27, -inf  ;;  %v4844_v30 = vadd.f32 %v1236_v10, %v72_v52  ;;  %v1266_v38 = vsel %vm1247_vm3, %v1245_v29, -inf  ;;  %v1246_v22 = vadd.f32 %v1238_v24, %v72_v52 }
 0x2d9   :  { %1258 = vmax.xlane.f32.xlu0 %v1257_v31  ;;  %1261 = vmax.xlane.f32.xlu1 %v1260_v25 }
 0x2da   :  { %v1263_v39 = vsel %vm1247_vm3, %v4844_v30, -inf  ;;  %v1269_v26 = vsel %vm1247_vm3, %v1246_v22, -inf }
 0x2dd   :  { %1267 = vmax.xlane.f32.xlu1 %v1266_v38  ;;  %1264 = vmax.xlane.f32.xlu0 %v1263_v39 }
 0x2e1   :  { %1270 = vmax.xlane.f32.xlu0 %v1269_v26 }
 0x2ee   :  { %742 = vrot.lane.b32.xlu1 %v4649_v8, %s4512_s25 }
 0x2f2   :  { %746 = vrot.lane.b32.xlu1 %v4671_v14, %s4512_s25 }
 0x2f6   :  { %748 = vrot.lane.b32.xlu1 %v4675_v15, %s4512_s25 }
 0x2f7   :  { %744 = vrot.lane.b32.xlu0 %v4655_v12, %s4512_s25 }
 0x2fa   :  { %752 = vrot.lane.b32.xlu1 %v4681_v16, %s4512_s25 }
 0x2fb   :  { %750 = vrot.lane.b32.xlu0 %v4669_v13, %s4512_s25 }
 0x2ff   :  { %754 = vrot.lane.b32.xlu0 %v4683_v17, %s4512_s25 }
 0x35e   :  { %v1250_v32 = vpop.xlane.xlu0 %1249 }
 0x35f   :  { %v1272_v8 = vsub.f32 %v1239_v56, %v1250_v32 }
 0x360   :  { %v1253_v33 = vpop.xlane.xlu1 %1252 }
 0x361   :  { %v1280_v34 = vmul.f32 1.442695, %v1272_v8  ;;  %v1273_v14 = vsub.f32 %v1240_v60, %v1253_v33 }
 0x362   :  { %v1256_v35 = vpop.xlane.xlu0 %1255 }
 0x363   :  { %4400 = vpow2.f32 %v1280_v34  ;;  %v1282_v15 = vmul.f32 1.442695, %v1273_v14  ;;  %v1274_v36 = vsub.f32 %v1241_v58, %v1256_v35 }
 0x365   :  { %4402 = vpow2.f32 %v1282_v15  ;;  %v1284_v12 = vmul.f32 1.442695, %v1274_v36 }
 0x366   :  { %v1259_v37 = vpop.xlane.xlu0 %1258  ;;  %v1262_v40 = vpop.xlane.xlu1 %1261 }
 0x367   :  { %4404 = vpow2.f32 %v1284_v12  ;;  %v1275_v16 = vsub.f32 %v1242_v2, %v1259_v37  ;;  %v1276_v41 = vsub.f32 %v1243_v27, %v1262_v40 }
 0x369   :  { %v1286_v13 = vmul.f32 1.442695, %v1275_v16  ;;  %v1288_v42 = vmul.f32 1.442695, %v1276_v41 }
 0x36a   :  { %v1268_v20 = vpop.xlane.xlu1 %1267  ;;  %v1265_v17 = vpop.xlane.xlu0 %1264 }
 0x36b   :  { %4406 = vpow2.f32 %v1286_v13  ;;  %v1278_v21 = vsub.f32 %v1245_v29, %v1268_v20  ;;  %v1277_v62 = vsub.f32 %v4844_v30, %v1265_v17 }
 0x36c   :  { %4408 = vpow2.f32 %v1288_v42 }
 0x36d   :  { %v4864_v44 = vpop.eup %4400  ;;  %v1292_v45 = vmul.f32 1.442695, %v1278_v21  ;;  %v1290_v63 = vmul.f32 1.442695, %v1277_v62 }
 0x36e   :  { %v1271_v46 = vpop.xlane.xlu0 %1270  ;;  %v1296_v47 = vsel %vm1247_vm3, %v4864_v44, 0.0  ;;  %v743_v4 = vpop.permute.xlu1 %742 }
 0x36f   :  { %v4868_v48 = vpop.eup %4402  ;;  %v1279_v49 = vsub.f32 %v1246_v22, %v1271_v46  ;;  %1297 = vadd.xlane.f32.xlu1 %v1296_v47  ;;  %4410 = vpow2.f32 %v1292_v45 }
 0x370   :  { %v1299_v50 = vsel %vm1247_vm3, %v4868_v48, 0.0 }
 0x371   :  { %v4872_v51 = vpop.eup %4404  ;;  %v1294_v52 = vmul.f32 1.442695, %v1279_v49  ;;  %1300 = vadd.xlane.f32.xlu0 %v1299_v50 }
 0x372   :  { %v1302_v53 = vsel %vm1247_vm3, %v4872_v51, 0.0  ;;  %v745_v3 = vpop.permute.xlu0 %744  ;;  %v747_v6 = vpop.permute.xlu1 %746 }
 0x373   :  { %1303 = vadd.xlane.f32.xlu1 %v1302_v53  ;;  %4412 = vpow2.f32 %v1294_v52 }
 0x374   :  { %4414 = vpow2.f32 %v1290_v63 }
 0x375   :  { %v4876_v54 = vpop.eup %4406 }
 0x376   :  { %v1305_v55 = vsel %vm1247_vm3, %v4876_v54, 0.0  ;;  %v4880_v56 = vpop.eup %4408  ;;  %v751_v5 = vpop.permute.xlu0 %750 }
 0x377   :  { %1306 = vadd.xlane.f32.xlu0 %v1305_v55  ;;  %v1308_v57 = vsel %vm1247_vm3, %v4880_v56, 0.0  ;;  %v749_v9 = vpop.permute.xlu1 %748  ;;  %v766_v19 = vcombine.low %v743_v4, %v751_v5 }
 0x379   :  { %v4884_v58 = vpop.eup %4410  ;;  %v774_v25 = vrot.slane %v766_v19, %v4700_v28 }
 0x37a   :  { %v1314_v59 = vsel %vm1247_vm3, %v4884_v58, 0.0  ;;  %v755_v7 = vpop.permute.xlu0 %754 }
 0x37b   :  { %1309 = vadd.xlane.f32.xlu0 %v1308_v57  ;;  %v782_v10 = vcombine.low %v747_v6, %v755_v7  ;;  %v783_v11 = vcombine.high %v747_v6, %v755_v7  ;;  %v753_v31 = vpop.permute.xlu1 %752 }
 0x37c   :  { %v834_v15 = vcombine.low %v745_v3, %v753_v31  ;;  %v835_v36 = vcombine.high %v745_v3, %v753_v31 }
 0x37d   :  { %v4888_v60 = vpop.eup %4412  ;;  %v790_v27 = vrot.slane %v782_v10, %v4700_v28  ;;  %v797_v24 = vrot.slane %v783_v11, %v4700_v28 }
 0x37e   :  { %v1317_v61 = vsel %vm1247_vm3, %v4888_v60, 0.0  ;;  %v4895_v0 = vpop.eup %4414  ;;  %v842_v17 = vrot.slane %v834_v15, %v4700_v28  ;;  %v849_v21 = vrot.slane %v835_v36, %v4700_v28 }
 0x37f   :  { %1315 = vadd.xlane.f32.xlu0 %v1314_v59  ;;  %v1311_v2 = vsel %vm1247_vm3, %v4895_v0, 0.0  ;;  %v798_v30 = vcombine.low %v774_v25, %v790_v27  ;;  %v799_v38 = vcombine.high %v774_v25, %v790_v27 }
 0x381   :  { %v806_v32 = vrot.slane %v798_v30, %v4721_v43  ;;  %v813_v8 = vrot.slane %v799_v38, %v4721_v43 }
 0x383   :  { %1318 = vadd.xlane.f32.xlu0 %v1317_v61  ;;  %v902_v12 = vcombine.low %v806_v32, %v813_v8  ;;  %v4063_v37 = vcombine.high %v806_v32, %v813_v8 }
 0x384   :  { %756 = vrot.lane.b32.xlu1 %v4689_v18, %s4512_s25  ;;  %v767_v18 = vcombine.high %v743_v4, %v751_v5 }
 0x385   :  { %v909_v45 = vrot.slane %v902_v12, %v4700_v28  ;;  %v917_v49 = vrot.slane %v4063_v37, %v4700_v28 }
 0x386   :  { %v781_v29 = vrot.slane %v767_v18, %v4700_v28 }
 0x387   :  { %v934_v5 = vcombine.low %v909_v45, %v917_v49  ;;  %v935_v38 = vcombine.high %v909_v45, %v917_v49 }
 0x388   :  { %v814_v39 = vcombine.low %v781_v29, %v797_v24  ;;  %v815_v22 = vcombine.high %v781_v29, %v797_v24 }
 0x389   :  { %v942_v29 = vrot.slane %v934_v5, %v4721_v43  ;;  %v949_v12 = vrot.slane %v935_v38, %v4721_v43 }
 0x38a   :  { %v822_v33 = vrot.slane %v814_v39, %v4721_v43  ;;  %v829_v34 = vrot.slane %v815_v22, %v4721_v43 }
 0x38c   :  { %v918_v40 = vcombine.low %v822_v33, %v829_v34  ;;  %v4064_v16 = vcombine.high %v822_v33, %v829_v34 }
 0x38e   :  { %v925_v50 = vrot.slane %v918_v40, %v4700_v28  ;;  %v933_v52 = vrot.slane %v4064_v16, %v4700_v28 }
 0x390   :  { %v950_v6 = vcombine.low %v925_v50, %v933_v52  ;;  %v951_v39 = vcombine.high %v925_v50, %v933_v52 }
 0x392   :  { %v958_v30 = vrot.slane %v950_v6, %v4721_v43  ;;  %v965_v37 = vrot.slane %v951_v39, %v4721_v43 }
 0x394   :  { %v966_v16 = vcombine.low %v942_v29, %v958_v30  ;;  %v968_v52 = vcombine.low %v949_v12, %v965_v37 }
 0x3a8   :  { %1312 = vadd.xlane.f32.xlu1 %v1311_v2 }
 0x3fc   :  { %v1298_v26 = vpop.xlane.xlu1 %1297 }
 0x3fd   :  { %4416 = vrcp.f32 %v1298_v26 }
 0x3fe   :  { %v1301_v14 = vpop.xlane.xlu0 %1300 }
 0x3ff   :  { %4418 = vrcp.f32 %v1301_v14 }
 0x400   :  { %v1304_v35 = vpop.xlane.xlu1 %1303 }
 0x404   :  { %v757_v41 = vpop.permute.xlu1 %756  ;;  %v1307_v13 = vpop.xlane.xlu0 %1306 }
 0x405   :  { %v850_v42 = vcombine.low %v749_v9, %v757_v41  ;;  %v851_v20 = vcombine.high %v749_v9, %v757_v41  ;;  %4420 = vrcp.f32 %v1307_v13  ;;  %v967_v13 = vcombine.high %v942_v29, %v958_v30 }
 0x406   :  { %4422 = vrcp.f32 %v1304_v35 }
 0x407   :  { %v858_v46 = vrot.slane %v850_v42, %v4700_v28  ;;  %v865_v47 = vrot.slane %v851_v20, %v4700_v28  ;;  %v4417_v24 = vpop.eup %4416 }
 0x408   :  { %v4915_v53 = vpop.xlane.xlu0 %1309  ;;  %v1328_v49 = vmul.f32 %v4417_v24, %v4864_v44 }
 0x409   :  { %v866_v55 = vcombine.low %v842_v17, %v858_v46  ;;  %v867_v57 = vcombine.high %v842_v17, %v858_v46  ;;  %v882_v59 = vcombine.low %v849_v21, %v865_v47  ;;  %v883_v61 = vcombine.high %v849_v21, %v865_v47  ;;  %v4419_v22 = vpop.eup %4418 }
 0x40a   :  { %v1329_v20 = vmul.f32 %v4419_v22, %v4868_v48 }
 0x40b   :  { %v874_v62 = vrot.slane %v866_v55, %v4721_v43  ;;  %v881_v63 = vrot.slane %v867_v57, %v4721_v43  ;;  %v890_v2 = vrot.slane %v882_v59, %v4721_v43  ;;  %v897_v3 = vrot.slane %v883_v61, %v4721_v43 }
 0x40c   :  { %v1316_v4 = vpop.xlane.xlu0 %1315  ;;  %v969_v55 = vcombine.high %v949_v12, %v965_v37  ;;  %v1336_v57 = vpack.c.bf16 %v1329_v20, %v1328_v49 }
 0x40d   :  { %v970_v7 = vcombine.low %v874_v62, %v881_v63  ;;  %v4065_v9 = vcombine.high %v874_v62, %v881_v63  ;;  %v986_v10 = vcombine.low %v890_v2, %v897_v3  ;;  %v4066_v11 = vcombine.high %v890_v2, %v897_v3 }
 0x40f   :  { %v977_v19 = vrot.slane %v970_v7, %v4700_v28  ;;  %v985_v18 = vrot.slane %v4065_v9, %v4700_v28  ;;  %v993_v27 = vrot.slane %v986_v10, %v4700_v28  ;;  %v1001_v31 = vrot.slane %v4066_v11, %v4700_v28  ;;  %v4421_v33 = vpop.eup %4420 }
 0x410   :  { %v1319_v25 = vpop.xlane.xlu0 %1318  ;;  %v4423_v36 = vpop.eup %4422  ;;  %v1331_v17 = vmul.f32 %v4421_v33, %v4876_v54 }
 0x411   :  { %4424 = vrcp.f32 %v1319_v25  ;;  %v1002_v26 = vcombine.low %v977_v19, %v985_v18  ;;  %v1018_v32 = vcombine.low %v993_v27, %v1001_v31  ;;  %v1003_v8 = vcombine.high %v977_v19, %v985_v18 }
 0x412   :  { %v1019_v34 = vcombine.high %v993_v27, %v1001_v31  ;;  %4426 = vrcp.f32 %v1316_v4  ;;  %v1330_v50 = vmul.f32 %v4423_v36, %v4872_v51 }
 0x413   :  { %v1010_v14 = vrot.slane %v1002_v26, %v4721_v43  ;;  %v1026_v35 = vrot.slane %v1018_v32, %v4721_v43  ;;  %v1017_v15 = vrot.slane %v1003_v8, %v4721_v43  ;;  %4428 = vrcp.f32 %v4915_v53 }
 0x414   :  { %v1033_v40 = vrot.slane %v1019_v34, %v4721_v43  ;;  %v1337_v59 = vpack.c.bf16 %v1331_v17, %v1330_v50 }
 0x415   :  { %v1034_v41 = vcombine.low %v1010_v14, %v1026_v35  ;;  %v1035_v42 = vcombine.high %v1010_v14, %v1026_v35 }
 0x416   :  { %v1036_v46 = vcombine.low %v1017_v15, %v1033_v40  ;;  %v1037_v47 = vcombine.high %v1017_v15, %v1033_v40 }
 0x417   :  { %v1038_v21 = vpack.c.bf16 %v1034_v41, %v966_v16  ;;  %v1039_v45 = vpack.c.bf16 %v1035_v42, %v967_v13 }
 0x418   :  { %v1040_v54 = vpack.c.bf16 %v1036_v46, %v968_v52  ;;  %v1041_v61 = vpack.c.bf16 %v1037_v47, %v969_v55 }
 0x419   :  { %4217 = vmatpush3.bf16.msra.mxu1 %v1038_v21  ;;  %4223 = vmatpush3.bf16.msra.mxu0 %v1039_v45 }
 0x41a   :  { %4228 = vmatprep.subr.bf16.mxu1 %v4504_v1  ;;  %4234 = vmatprep.subr.bf16.mxu0 %v4504_v1 }
 0x41b   :  { %v4425_v48 = vpop.eup %4424 }
 0x41c   :  { %4219 = vmatmul.mubr.msk.bf16.vlgmr.msra.gmra.mrb[12].mxu1 %vm1247_vm3, %v1336_v57  ;;  %4225 = vmatmul.mubr.msk.bf16.vlgmr.msra.gmra.mrb[8].mxu0 %vm1247_vm3, %v1337_v59  ;;  %v4427_v44 = vpop.eup %4426  ;;  %v1335_v51 = vmul.f32 %v4425_v48, %v4888_v60 }
 0x41d   :  { %4229 = vmatpush3.bf16.msra.mxu1 %v1040_v54  ;;  %4235 = vmatpush3.bf16.msra.mxu0 %v1041_v61  ;;  %v1334_v62 = vmul.f32 %v4427_v44, %v4884_v58  ;;  %v4429_v2 = vpop.eup %4428 }
 0x41e   :  { %4236 = vmatprep.mubr.msk.bf16.mxu0 %vm4505_vm0, %v4504_v1  ;;  %4230 = vmatprep.mubr.msk.bf16.mxu1 %vm4505_vm0, %v4504_v1  ;;  %v1332_v4 = vmul.f32 %v4429_v2, %v4880_v56 }
 0x41f   :  { %4240 = vmatprep.subr.bf16.mxu1 %v4504_v1  ;;  %4248 = vmatprep.subr.bf16.mxu0 %v4504_v1  ;;  %v1339_v63 = vpack.c.bf16 %v1335_v51, %v1334_v62 }
 0x424   :  { %4237 = vmatmul.mubr.msk.bf16.vlgmr.msra.gmra.mrb[12].mxu0 %vm1247_vm3, %v1339_v63 }
 0x425   :  { %4252 = vmatprep.mubr.msk.bf16.mxu0 %vm4505_vm0, %v4504_v1 }
 0x435   :  { %v1313_v60 = vpop.xlane.xlu1 %1312 }
 0x436   :  { %4430 = vrcp.f32 %v1313_v60 }
 0x440   :  { %v4431_v3 = vpop.eup %4430 }
 0x441   :  { %v1333_v5 = vmul.f32 %v4431_v3, %v4895_v0 }
 0x443   :  { %v1338_v6 = vpack.c.bf16 %v1333_v5, %v1332_v4 }
 0x445   :  { %4231 = vmatmul.mubr.msk.bf16.vlgmr.msra.gmra.mrb[16].mxu1 %vm1247_vm3, %v1338_v6 }
 0x446   :  { %4244 = vmatprep.mubr.msk.bf16.mxu1 %vm4505_vm0, %v4504_v1 }
 0x4ef   :  { %v1377_v58 = vpop.f32.mrb[12].mxu1  ;;  %v1421_v7 = vpop.f32.mrb[8].mxu0 }
 0x4f0   :  { %v4220_v9 = vpop.f32.mrb[13].mxu1  ;;  %v4226_v10 = vpop.f32.mrb[9].mxu0 }
 0x4f1   :  { %v1380_v11 = vpop.f32.mrb[14].mxu1  ;;  %v1424_v53 = vpop.f32.mrb[10].mxu0 }
 0x4f2   :  { %v4221_v19 = vpop.f32.mrb[15].mxu1  ;;  %v4227_v18 = vpop.f32.mrb[11].mxu0 }
 0x4f7   :  { %v1509_v27 = vpop.f32.mrb[12].mxu0 }
 0x4f8   :  { %v1532_v31 = vcombine.low %v1421_v7, %v1509_v27  ;;  %v1533_v24 = vcombine.high %v1421_v7, %v1509_v27  ;;  %v4238_v56 = vpop.f32.mrb[13].mxu0 }
 0x4f9   :  { %v1512_v25 = vpop.f32.mrb[14].mxu0 }
 0x4fa   :  { %v1600_v0 = vcombine.low %v1424_v53, %v1512_v25  ;;  %v1601_v29 = vcombine.high %v1424_v53, %v1512_v25  ;;  %v4239_v30 = vpop.f32.mrb[15].mxu0  ;;  %v1540_v32 = vrot.slane %v1532_v31, %v4700_v28  ;;  %v1547_v8 = vrot.slane %v1533_v24, %v4700_v28 }
 0x4fc   :  { %v1608_v41 = vrot.slane %v1600_v0, %v4700_v28  ;;  %v1615_v13 = vrot.slane %v1601_v29, %v4700_v28 }
 0x518   :  { %v1465_v38 = vpop.f32.mrb[16].mxu1 }
 0x519   :  { %v1516_v39 = vcombine.low %v1377_v58, %v1465_v38  ;;  %v1517_v22 = vcombine.high %v1377_v58, %v1465_v38  ;;  %v4232_v26 = vpop.f32.mrb[17].mxu1  ;;  %v4386_v58 = vld [vmem:[%s5455_s6] sm:$0xff]  }
 0x51a   :  { %v1468_v33 = vpop.f32.mrb[18].mxu1  ;;  %4241 = vmatpush3.bf16.msra.mxu1 %v4386_v58 }
 0x51b   :  { %v1524_v34 = vrot.slane %v1516_v39, %v4700_v28  ;;  %v1531_v14 = vrot.slane %v1517_v22, %v4700_v28  ;;  %v1584_v35 = vcombine.low %v1380_v11, %v1468_v33  ;;  %v1585_v15 = vcombine.high %v1380_v11, %v1468_v33  ;;  %v4233_v36 = vpop.f32.mrb[19].mxu1  ;;  %4242 = vmatprep.subr.bf16.mxu1 %v4504_v1  ;;  %v4387_v39 = vld [vmem:[%s5455_s6 + $0x8] sm:$0xff]   ;;  %s4513_s6 = smov 16  }
 0x51d   :  { %v1548_v12 = vcombine.low %v1524_v34, %v1540_v32  ;;  %v1549_v37 = vcombine.high %v1524_v34, %v1540_v32  ;;  %v1564_v40 = vcombine.low %v1531_v14, %v1547_v8  ;;  %v1565_v16 = vcombine.high %v1531_v14, %v1547_v8 }
 0x51e   :  { %v1592_v42 = vrot.slane %v1584_v35, %v4700_v28  ;;  %v1599_v20 = vrot.slane %v1585_v15, %v4700_v28  ;;  %4243 = vmatpush3.bf16.msra.mxu1 %v4387_v39  ;;  %v4390_v39 = vld [vmem:[%s5457_s8] sm:$0xff]  }
 0x51f   :  { %v1556_v17 = vrot.slane %v1548_v12, %v4721_v43  ;;  %v1563_v21 = vrot.slane %v1549_v37, %v4721_v43  ;;  %v1572_v45 = vrot.slane %v1564_v40, %v4721_v43  ;;  %v1579_v46 = vrot.slane %v1565_v16, %v4721_v43  ;;  %4256 = vmatprep.subr.bf16.mxu1 %v4504_v1 }
 0x520   :  { %v1616_v47 = vcombine.low %v1592_v42, %v1608_v41  ;;  %v1617_v49 = vcombine.high %v1592_v42, %v1608_v41  ;;  %v1632_v50 = vcombine.low %v1599_v20, %v1615_v13  ;;  %v1633_v52 = vcombine.high %v1599_v20, %v1615_v13  ;;  %4249 = vmatpush3.bf16.msra.mxu0 %v4390_v39 }
 0x521   :  { %v1652_v55 = vcombine.low %v1556_v17, %v1563_v21  ;;  %v4075_v57 = vcombine.high %v1556_v17, %v1563_v21  ;;  %v1668_v59 = vcombine.low %v1572_v45, %v1579_v46  ;;  %v4076_v48 = vcombine.high %v1572_v45, %v1579_v46  ;;  %4250 = vmatprep.subr.bf16.mxu0 %v4504_v1 }
 0x522   :  { %v1624_v54 = vrot.slane %v1616_v47, %v4721_v43  ;;  %v1631_v61 = vrot.slane %v1617_v49, %v4721_v43  ;;  %v1640_v44 = vrot.slane %v1632_v50, %v4721_v43  ;;  %v1647_v51 = vrot.slane %v1633_v52, %v4721_v43 }
 0x523   :  { %v1659_v62 = vrot.slane %v1652_v55, %v4700_v28  ;;  %v1667_v63 = vrot.slane %v4075_v57, %v4700_v28  ;;  %v1675_v60 = vrot.slane %v1668_v59, %v4700_v28  ;;  %v1683_v2 = vrot.slane %v4076_v48, %v4700_v28 }
 0x524   :  { %v1720_v3 = vcombine.low %v1624_v54, %v1631_v61  ;;  %v4077_v4 = vcombine.high %v1624_v54, %v1631_v61  ;;  %v1736_v5 = vcombine.low %v1640_v44, %v1647_v51  ;;  %v4078_v6 = vcombine.high %v1640_v44, %v1647_v51  ;;  %v4079_v61 = vld [vmem:[%s5456_s7] ss:$0 sm:$0xff] }
 0x525   :  { %v1685_v7 = vcombine.high %v1659_v62, %v1667_v63  ;;  %v1701_v9 = vcombine.high %v1675_v60, %v1683_v2  ;;  %v1684_v10 = vcombine.low %v1659_v62, %v1667_v63  ;;  %v1700_v11 = vcombine.low %v1675_v60, %v1683_v2 }
 0x526   :  { %v1727_v53 = vrot.slane %v1720_v3, %v4700_v28  ;;  %v1735_v19 = vrot.slane %v4077_v4, %v4700_v28  ;;  %v1743_v18 = vrot.slane %v1736_v5, %v4700_v28  ;;  %v1751_v27 = vrot.slane %v4078_v6, %v4700_v28  ;;  %v4476_v3 = vld [vmem:[%s5481_s26] sm:$0xff]  ;;  %v4477_v6 = vld [vmem:[%s5481_s26 + $0x8] sm:$0xff] }
 0x527   :  { %v1699_v31 = vrot.slane %v1685_v7, %v4721_v43  ;;  %v1715_v24 = vrot.slane %v1701_v9, %v4721_v43  ;;  %v1692_v56 = vrot.slane %v1684_v10, %v4721_v43  ;;  %v1708_v25 = vrot.slane %v1700_v11, %v4721_v43  ;;  %v4388_v9 = vld [vmem:[%s5459_s10] sm:$0xff]   ;;  %v4389_v10 = vld [vmem:[%s5459_s10 + $0x8] sm:$0xff]  }
 0x528   :  { %v1753_v0 = vcombine.high %v1727_v53, %v1735_v19  ;;  %v1769_v29 = vcombine.high %v1743_v18, %v1751_v27  ;;  %v1752_v30 = vcombine.low %v1727_v53, %v1735_v19  ;;  %v1768_v38 = vcombine.low %v1743_v18, %v1751_v27  ;;  %v69_v11 = vld [vmem:[%s5483_s24] sm:$0xff]  ;;  %v70_v53 = vld [vmem:[%s5483_s24 + $0x8] sm:$0xff] }
 0x529   :  { %v1718_v22 = vcombine.low %v1699_v31, %v1715_v24  ;;  %v1716_v26 = vcombine.low %v1692_v56, %v1708_v25  ;;  %v1717_v32 = vcombine.high %v1692_v56, %v1708_v25  ;;  %v1719_v8 = vcombine.high %v1699_v31, %v1715_v24 }
 0x52a   :  { %v1767_v33 = vrot.slane %v1753_v0, %v4721_v43  ;;  %v1783_v34 = vrot.slane %v1769_v29, %v4721_v43  ;;  %v1760_v14 = vrot.slane %v1752_v30, %v4721_v43  ;;  %v1776_v35 = vrot.slane %v1768_v38, %v4721_v43 }
 0x52b   :  { %v1996_v19 = vpack.c.bf16 %v70_v53, %v69_v11 }
 0x52c   :  { %v1786_v15 = vcombine.low %v1767_v33, %v1783_v34  ;;  %v1785_v36 = vcombine.high %v1760_v14, %v1776_v35  ;;  %v1784_v12 = vcombine.low %v1760_v14, %v1776_v35  ;;  %v1787_v37 = vcombine.high %v1767_v33, %v1783_v34 }
 0x52e   :  { %v4359_v40 = vpack.i.bf16 %v1786_v15, %v1718_v22  ;;  %v4354_v16 = vpack.i.bf16 %v1785_v36, %v1717_v32  ;;  %v4364_v41 = vpack.i.bf16 %v1787_v37, %v1719_v8  ;;  %v4391_v22 = vld [vmem:[%s5457_s8 + $0x8] sm:$0xff]  }
 0x52f   :  { %4251 = vmatpush3.bf16.msra.mxu0 %v4391_v22 }
 0x530   :  { %4360 = vrot.lane.b32.xlu0 %v4359_v40, %s4513_s6  ;;  %4355 = vrot.lane.b32.xlu1 %v4354_v16, %s4514_s29 }
 0x531   :  { %4264 = vmatprep.subr.bf16.mxu0 %v4504_v1 }
 0x534   :  { %4365 = vrot.lane.b32.xlu1 %v4364_v41, %s4515_s1  ;;  %v1918_v41 = vsub.s32 0, %v4693_v23 }
 0x5a2   :  { %v4361_v13 = vpop.permute.xlu0 %4360  ;;  %v4356_v42 = vpop.permute.xlu1 %4355 }
 0x5a3   :  { %v4358_v20 = vunpack.i.h.bf16 %v4356_v42  ;;  %v4357_v17 = vunpack.i.l.bf16 %v4356_v42  ;;  %v4363_v21 = vunpack.i.h.bf16 %v4361_v13  ;;  %v4362_v45 = vunpack.i.l.bf16 %v4361_v13  ;;  %v75_v13 = vld [vmem:[%s5467_s18] sm:$0x7] }
 0x5a4   :  { %v1919_v42 = vrot.slane %v75_v13, %v1918_v41 }
 0x5a5   :  { %v1812_v46 = vsel %vm1042_vm2, %v1716_v26, %v4357_v17  ;;  %v1813_v47 = vsel %vm1042_vm2, %v1784_v12, %v4358_v20  ;;  %v4087_v26 = vld [vmem:[%s5460_s11] ss:$0 sm:$0xff] }
 0x5a6   :  { %v4366_v49 = vpop.permute.xlu1 %4365  ;;  %v1814_v55 = vsel %vm1247_vm3, %v1812_v46, %v4362_v45  ;;  %v1815_v57 = vsel %vm1247_vm3, %v1813_v47, %v4363_v21  ;;  %v76_v17 = vld [vmem:[%s5468_s19] sm:$0x7] }
 0x5a7   :  { %v4368_v50 = vunpack.i.h.bf16 %v4366_v49  ;;  %v4367_v52 = vunpack.i.l.bf16 %v4366_v49  ;;  %v1925_v49 = vrot.slane %v76_v17, %v1918_v41 }
 0x5a9   :  { %v1817_v59 = vsel %vm1816_vm4, %v1814_v55, %v4367_v52  ;;  %v1818_v48 = vsel %vm1816_vm4, %v1815_v57, %v4368_v50 }
 0x5aa   :  { %v1819_v54 = vpack.c.bf16 %v1818_v48, %v1817_v59 }
 0x5ac   :  { %4245 = vmatmul.mubr.msk.bf16.vlgmr.msra.gmra.mrb[20].mxu1 %vm101_vm1, %v1819_v54 }
 0x5ad   :  { %4260 = vmatprep.mubr.msk.bf16.mxu1 %vm4505_vm0, %v4504_v1  ;;  %4257 = vmatpush3.bf16.msra.mxu1 %v4388_v9 }
 0x5ae   :  { %4258 = vmatprep.subr.bf16.mxu1 %v4504_v1 }
 0x5b1   :  { %4259 = vmatpush3.bf16.msra.mxu1 %v4389_v10 }
 0x5b2   :  { %4270 = vmatprep.subr.bf16.mxu1 %v4504_v1 }
 0x5b4   :  { %4261 = vmatmul.mubr.msk.bf16.vlgmr.msra.gmra.mrb[24].mxu1 %vm101_vm1, %v1996_v19 }
 0x5b5   :  { %4272 = vmatprep.mubr.msk.bf16.mxu1 %vm4505_vm0, %v4504_v1 }
 0x67f   :  { %v1880_v44 = vpop.f32.mrb[20].mxu1 }
 0x680   :  { %v1881_v51 = vadd.f32 %v4079_v61, %v1880_v44  ;;  %v4246_v62 = vpop.f32.mrb[21].mxu1 }
 0x681   :  { %v1883_v63 = vpop.f32.mrb[22].mxu1 }
 0x682   :  { %v1884_v60 = vadd.f32 %v4079_v61, %v1883_v63  ;;  %v4247_v2 = vpop.f32.mrb[23].mxu1  ;;  %v1887_v4 = vadd.f32 %v4476_v3, %v1881_v51 }
 0x684   :  { %v1889_v5 = vsel %vm101_vm1, %v1887_v4, 0.0  ;;  %v1888_v58 = vadd.f32 %v4477_v6, %v1884_v60 }
 0x685   :  { %1890 = vadd.xlane.f32.xlu1 %v1889_v5 }
 0x686   :  { %v1892_v7 = vsel %vm101_vm1, %v1888_v58, 0.0 }
 0x687   :  { %1893 = vadd.xlane.f32.xlu0 %v1892_v7  ;;  %v2057_v32 = vpop.f32.mrb[24].mxu1 }
 0x688   :  { %v5051_v8 = vadd.f32 %v4087_v26, %v2057_v32  ;;  %v4262_v33 = vpop.f32.mrb[25].mxu1 }
 0x689   :  { %v2060_v34 = vpop.f32.mrb[26].mxu1 }
 0x68a   :  { %v5053_v14 = vadd.f32 %v4087_v26, %v2060_v34  ;;  %v4263_v35 = vpop.f32.mrb[27].mxu1 }
 0x712   :  { %v1891_v18 = vpop.xlane.xlu1 %1890 }
 0x713   :  { %v1896_v27 = vmul.f32 0.03125, %v1891_v18 }
 0x714   :  { %v1894_v31 = vpop.xlane.xlu0 %1893 }
 0x715   :  { %v1898_v24 = vsub.f32 %v1887_v4, %v1896_v27  ;;  %v1897_v56 = vmul.f32 0.03125, %v1894_v31 }
 0x717   :  { %v1899_v25 = vsub.f32 %v1888_v58, %v1897_v56  ;;  %v1900_v0 = vmul.f32 %v1898_v24, %v1898_v24 }
 0x719   :  { %v1902_v29 = vsel %vm101_vm1, %v1900_v0, 0.0  ;;  %v1901_v30 = vmul.f32 %v1899_v25, %v1899_v25 }
 0x71a   :  { %1903 = vadd.xlane.f32.xlu0 %v1902_v29 }
 0x71b   :  { %v1905_v38 = vsel %vm101_vm1, %v1901_v30, 0.0 }
 0x71c   :  { %1906 = vadd.xlane.f32.xlu1 %v1905_v38 }
 0x72d   :  { %2364 = vrot.lane.b32.xlu1 %v5053_v14, %s4507_s0 }
 0x730   :  { %2362 = vrot.lane.b32.xlu0 %v5051_v8, %s4507_s0 }
 0x731   :  { %2368 = vrot.lane.b32.xlu1 %v5051_v8, %s4506_s30 }
 0x734   :  { %2370 = vrot.lane.b32.xlu0 %v5053_v14, %s4506_s30 }
 0x735   :  { %2374 = vrot.lane.b32.xlu1 %v5051_v8, %s4508_s5 }
 0x738   :  { %2376 = vrot.lane.b32.xlu0 %v5053_v14, %s4508_s5 }
 0x7a7   :  { %v1904_v15 = vpop.xlane.xlu0 %1903 }
 0x7a8   :  { %v1908_v36 = vmul.f32 0.03125, %v1904_v15 }
 0x7a9   :  { %v1907_v12 = vpop.xlane.xlu1 %1906 }
 0x7aa   :  { %v1910_v37 = vadd.f32 1e-05, %v1908_v36  ;;  %v1909_v40 = vmul.f32 0.03125, %v1907_v12 }
 0x7ab   :  { %v5085_v48 = vpop.permute.xlu0 %2362 }
 0x7ac   :  { %4432 = vrsqrt.f32 %v1910_v37  ;;  %v1911_v16 = vadd.f32 1e-05, %v1909_v40 }
 0x7ad   :  { %v5083_v59 = vpop.permute.xlu1 %2364 }
 0x7ae   :  { %4434 = vrsqrt.f32 %v1911_v16 }
 0x7af   :  { %v5089_v61 = vpop.permute.xlu0 %2370 }
 0x7b0   :  { %v2448_v3 = vcombine.low %v5053_v14, %v5089_v61  ;;  %v2449_v4 = vcombine.high %v5053_v14, %v5089_v61 }
 0x7b1   :  { %v5087_v54 = vpop.permute.xlu1 %2368 }
 0x7b2   :  { %v2380_v62 = vcombine.low %v5051_v8, %v5087_v54  ;;  %v2381_v63 = vcombine.high %v5051_v8, %v5087_v54  ;;  %v2456_v11 = vrot.slane %v2448_v3, %v4700_v28  ;;  %v2463_v53 = vrot.slane %v2449_v4, %v4700_v28 }
 0x7b3   :  { %v5093_v51 = vpop.permute.xlu0 %2376 }
 0x7b4   :  { %v2464_v5 = vcombine.low %v5083_v59, %v5093_v51  ;;  %v2465_v6 = vcombine.high %v5083_v59, %v5093_v51  ;;  %v2388_v58 = vrot.slane %v2380_v62, %v4700_v28  ;;  %v2395_v7 = vrot.slane %v2381_v63, %v4700_v28 }
 0x7b5   :  { %v5091_v44 = vpop.permute.xlu1 %2374 }
 0x7b6   :  { %v4433_v20 = vpop.eup %4432  ;;  %v2396_v60 = vcombine.low %v5085_v48, %v5091_v44  ;;  %v2397_v2 = vcombine.high %v5085_v48, %v5091_v44  ;;  %v2472_v19 = vrot.slane %v2464_v5, %v4700_v28  ;;  %v2479_v18 = vrot.slane %v2465_v6, %v4700_v28 }
 0x7b7   :  { %v1914_v21 = vmul.f32 %v4433_v20, %v1898_v24 }
 0x7b8   :  { %v4435_v45 = vpop.eup %4434  ;;  %v2404_v9 = vrot.slane %v2396_v60, %v4700_v28  ;;  %v2411_v10 = vrot.slane %v2397_v2, %v4700_v28  ;;  %v2481_v0 = vcombine.high %v2456_v11, %v2472_v19  ;;  %v2496_v29 = vcombine.low %v2463_v53, %v2479_v18 }
 0x7b9   :  { %v1920_v46 = vmul.f32 %v1919_v42, %v1914_v21  ;;  %v1915_v47 = vmul.f32 %v4435_v45, %v1899_v25  ;;  %v2480_v25 = vcombine.low %v2456_v11, %v2472_v19  ;;  %v2497_v30 = vcombine.high %v2463_v53, %v2479_v18 }
 0x7ba   :  { %v2412_v27 = vcombine.low %v2388_v58, %v2404_v9  ;;  %v2413_v31 = vcombine.high %v2388_v58, %v2404_v9  ;;  %v2428_v24 = vcombine.low %v2395_v7, %v2411_v10  ;;  %v2429_v56 = vcombine.high %v2395_v7, %v2411_v10 }
 0x7bb   :  { %v1921_v50 = vmul.f32 %v1919_v42, %v1915_v47  ;;  %v5074_v52 = vadd.f32 %v1925_v49, %v1920_v46  ;;  %v2488_v32 = vrot.slane %v2480_v25, %v4721_v43  ;;  %v2495_v33 = vrot.slane %v2481_v0, %v4721_v43 }
 0x7bc   :  { %v2420_v38 = vrot.slane %v2412_v27, %v4721_v43  ;;  %v2427_v39 = vrot.slane %v2413_v31, %v4721_v43  ;;  %v2436_v22 = vrot.slane %v2428_v24, %v4721_v43  ;;  %v2443_v26 = vrot.slane %v2429_v56, %v4721_v43 }
 0x7bd   :  { %v5076_v55 = vadd.f32 %v1925_v49, %v1921_v50  ;;  %v2504_v34 = vrot.slane %v2496_v29, %v4721_v43  ;;  %v2511_v35 = vrot.slane %v2497_v30, %v4721_v43  ;;  %v2584_v40 = vcombine.low %v2488_v32, %v2495_v33 }
 0x7be   :  { %v2516_v15 = vcombine.low %v2420_v38, %v2427_v39  ;;  %v4095_v36 = vcombine.high %v2420_v38, %v2427_v39  ;;  %v2532_v12 = vcombine.low %v2436_v22, %v2443_v26  ;;  %v4096_v37 = vcombine.high %v2436_v22, %v2443_v26 }
 0x7bf   :  { %v1928_v57 = vpack.c.bf16 %v5076_v55, %v5074_v52  ;;  %v4097_v16 = vcombine.high %v2488_v32, %v2495_v33  ;;  %v2600_v41 = vcombine.low %v2504_v34, %v2511_v35  ;;  %v4098_v13 = vcombine.high %v2504_v34, %v2511_v35  ;;  %v4083_v32 = vld [vmem:[%s5458_s9] ss:$0 sm:$0xff] }
 0x7c0   :  { %v2523_v42 = vrot.slane %v2516_v15, %v4700_v28  ;;  %v2531_v20 = vrot.slane %v4095_v36, %v4700_v28  ;;  %v2539_v17 = vrot.slane %v2532_v12, %v4700_v28  ;;  %v2547_v21 = vrot.slane %v4096_v37, %v4700_v28 }
 0x7c1   :  { %4253 = vmatmul.mubr.msk.bf16.vlgmr.msra.gmra.mrb[16].mxu0 %vm101_vm1, %v1928_v57  ;;  %v2591_v45 = vrot.slane %v2584_v40, %v4700_v28  ;;  %v2599_v46 = vrot.slane %v4097_v16, %v4700_v28  ;;  %v2607_v47 = vrot.slane %v2600_v41, %v4700_v28  ;;  %v2615_v49 = vrot.slane %v4098_v13, %v4700_v28 }
 0x7c2   :  { %4266 = vmatprep.mubr.msk.bf16.mxu0 %vm4505_vm0, %v4504_v1  ;;  %v2548_v50 = vcombine.low %v2523_v42, %v2531_v20  ;;  %v2564_v57 = vcombine.low %v2539_v17, %v2547_v21  ;;  %v2549_v62 = vcombine.high %v2523_v42, %v2531_v20  ;;  %v2565_v63 = vcombine.high %v2539_v17, %v2547_v21 }
 0x7c3   :  { %v2616_v60 = vcombine.low %v2591_v45, %v2599_v46  ;;  %v2632_v2 = vcombine.low %v2607_v47, %v2615_v49  ;;  %v2617_v3 = vcombine.high %v2591_v45, %v2599_v46  ;;  %v2633_v4 = vcombine.high %v2607_v47, %v2615_v49 }
 0x7c4   :  { %v2556_v5 = vrot.slane %v2548_v50, %v4721_v43  ;;  %v2572_v6 = vrot.slane %v2564_v57, %v4721_v43  ;;  %v2563_v58 = vrot.slane %v2549_v62, %v4721_v43  ;;  %v2579_v7 = vrot.slane %v2565_v63, %v4721_v43 }
 0x7c5   :  { %v2624_v9 = vrot.slane %v2616_v60, %v4721_v43  ;;  %v2640_v10 = vrot.slane %v2632_v2, %v4721_v43  ;;  %v2631_v11 = vrot.slane %v2617_v3, %v4721_v43  ;;  %v2647_v53 = vrot.slane %v2633_v4, %v4721_v43 }
 0x7c6   :  { %v2580_v19 = vcombine.low %v2556_v5, %v2572_v6  ;;  %v2581_v18 = vcombine.high %v2556_v5, %v2572_v6  ;;  %v2582_v27 = vcombine.low %v2563_v58, %v2579_v7  ;;  %v2583_v25 = vcombine.high %v2563_v58, %v2579_v7 }
 0x7c7   :  { %v2648_v31 = vcombine.low %v2624_v9, %v2640_v10  ;;  %v2649_v24 = vcombine.high %v2624_v9, %v2640_v10  ;;  %v2650_v56 = vcombine.low %v2631_v11, %v2647_v53  ;;  %v2651_v0 = vcombine.high %v2631_v11, %v2647_v53 }
 0x7c9   :  { %v2652_v29 = vpack.c.bf16 %v2648_v31, %v2580_v19  ;;  %v2653_v30 = vpack.c.bf16 %v2649_v24, %v2581_v18  ;;  %v5143_v38 = vpack.c.bf16 %v2650_v56, %v2582_v27  ;;  %v5145_v39 = vpack.c.bf16 %v2651_v0, %v2583_v25 }
 0x7cb   :  { %v2960_v22 = vsel %vm1042_vm2, %v2652_v29, 0  ;;  %v3007_v26 = vsel %vm1042_vm2, %v2653_v30, 0 }
 0x7cc   :  { %4265 = vmatpush3.bf16.xpose.msra.mxu0 %v2960_v22  ;;  %4271 = vmatpush3.bf16.xpose.msra.mxu1 %v3007_v26 }
 0x7cd   :  { %4276 = vmatprep.subr.bf16.mxu0 %v4504_v1  ;;  %4282 = vmatprep.subr.bf16.mxu1 %v4504_v1 }
 0x894   :  { %v1989_v33 = vpop.f32.mrb[16].mxu0 }
 0x895   :  { %v1990_v34 = vadd.f32 %v4083_v32, %v1989_v33  ;;  %v4254_v35 = vpop.f32.mrb[17].mxu0 }
 0x896   :  { %v1992_v15 = vpop.f32.mrb[18].mxu0 }
 0x897   :  { %v1993_v36 = vadd.f32 %v4083_v32, %v1992_v15  ;;  %v4255_v12 = vpop.f32.mrb[19].mxu0  ;;  %2066 = vrot.lane.b32.xlu1 %v1990_v34, %s4507_s0 }
 0x899   :  { %2068 = vrot.lane.b32.xlu0 %v1993_v36, %s4507_s0  ;;  %s5484_s0 = sld [smem:[#allocation8_spill]] }
 0x89b   :  { %2072 = vrot.lane.b32.xlu1 %v1990_v34, %s4506_s30 }
 0x89d   :  { %2074 = vrot.lane.b32.xlu0 %v1993_v36, %s4506_s30 }
 0x89f   :  { %2078 = vrot.lane.b32.xlu1 %v1990_v34, %s4508_s5 }
 0x8a1   :  { %2080 = vrot.lane.b32.xlu0 %v1993_v36, %s4508_s5 }
 0x909   :  { %v2067_v37 = vpop.permute.xlu1 %2066 }
 0x90b   :  { %v2069_v40 = vpop.permute.xlu0 %2068 }
 0x90d   :  { %v2073_v16 = vpop.permute.xlu1 %2072 }
 0x90e   :  { %v2084_v41 = vcombine.low %v1990_v34, %v2073_v16  ;;  %v2085_v13 = vcombine.high %v1990_v34, %v2073_v16 }
 0x90f   :  { %v2075_v42 = vpop.permute.xlu0 %2074 }
 0x910   :  { %v2092_v45 = vrot.slane %v2084_v41, %v4700_v28  ;;  %v2099_v46 = vrot.slane %v2085_v13, %v4700_v28  ;;  %v2152_v47 = vcombine.low %v1993_v36, %v2075_v42  ;;  %v2153_v49 = vcombine.high %v1993_v36, %v2075_v42 }
 0x911   :  { %v2079_v20 = vpop.permute.xlu1 %2078 }
 0x912   :  { %v2100_v17 = vcombine.low %v2067_v37, %v2079_v20  ;;  %v2101_v21 = vcombine.high %v2067_v37, %v2079_v20  ;;  %v2160_v6 = vrot.slane %v2152_v47, %v4700_v28  ;;  %v2167_v58 = vrot.slane %v2153_v49, %v4700_v28 }
 0x913   :  { %v2081_v50 = vpop.permute.xlu0 %2080 }
 0x914   :  { %v2108_v57 = vrot.slane %v2100_v17, %v4700_v28  ;;  %v2115_v62 = vrot.slane %v2101_v21, %v4700_v28  ;;  %v2168_v63 = vcombine.low %v2069_v40, %v2081_v50  ;;  %v2169_v60 = vcombine.high %v2069_v40, %v2081_v50 }
 0x916   :  { %v2116_v2 = vcombine.low %v2092_v45, %v2108_v57  ;;  %v2117_v3 = vcombine.high %v2092_v45, %v2108_v57  ;;  %v2132_v4 = vcombine.low %v2099_v46, %v2115_v62  ;;  %v2133_v5 = vcombine.high %v2099_v46, %v2115_v62 }
 0x917   :  { %v2176_v7 = vrot.slane %v2168_v63, %v4700_v28  ;;  %v2183_v9 = vrot.slane %v2169_v60, %v4700_v28 }
 0x918   :  { %v2124_v10 = vrot.slane %v2116_v2, %v4721_v43  ;;  %v2131_v11 = vrot.slane %v2117_v3, %v4721_v43  ;;  %v2140_v53 = vrot.slane %v2132_v4, %v4721_v43  ;;  %v2147_v19 = vrot.slane %v2133_v5, %v4721_v43 }
 0x919   :  { %v2184_v18 = vcombine.low %v2160_v6, %v2176_v7  ;;  %v2185_v27 = vcombine.high %v2160_v6, %v2176_v7  ;;  %v2200_v31 = vcombine.low %v2167_v58, %v2183_v9  ;;  %v2201_v24 = vcombine.high %v2167_v58, %v2183_v9 }
 0x91a   :  { %v2220_v56 = vcombine.low %v2124_v10, %v2131_v11  ;;  %v4091_v25 = vcombine.high %v2124_v10, %v2131_v11  ;;  %v2236_v0 = vcombine.low %v2140_v53, %v2147_v19  ;;  %v4092_v29 = vcombine.high %v2140_v53, %v2147_v19 }
 0x91b   :  { %v2192_v30 = vrot.slane %v2184_v18, %v4721_v43  ;;  %v2199_v22 = vrot.slane %v2185_v27, %v4721_v43  ;;  %v2208_v26 = vrot.slane %v2200_v31, %v4721_v43  ;;  %v2215_v32 = vrot.slane %v2201_v24, %v4721_v43 }
 0x91c   :  { %v2227_v33 = vrot.slane %v2220_v56, %v4700_v28  ;;  %v2235_v34 = vrot.slane %v4091_v25, %v4700_v28  ;;  %v2243_v35 = vrot.slane %v2236_v0, %v4700_v28  ;;  %v2251_v15 = vrot.slane %v4092_v29, %v4700_v28  ;;  %v73_v0 = vld [vmem:[%s5484_s0] sm:$0xff] }
 0x91d   :  { %v2288_v36 = vcombine.low %v2192_v30, %v2199_v22  ;;  %v4093_v12 = vcombine.high %v2192_v30, %v2199_v22  ;;  %v2304_v37 = vcombine.low %v2208_v26, %v2215_v32  ;;  %v4094_v40 = vcombine.high %v2208_v26, %v2215_v32 }
 0x91e   :  { %v2252_v16 = vcombine.low %v2227_v33, %v2235_v34  ;;  %v2268_v41 = vcombine.low %v2243_v35, %v2251_v15  ;;  %v2253_v63 = vcombine.high %v2227_v33, %v2235_v34  ;;  %v2269_v60 = vcombine.high %v2243_v35, %v2251_v15  ;;  %v74_v34 = vld [vmem:[%s5484_s0 + $0x8] sm:$0xff] }
 0x91f   :  { %v2295_v13 = vrot.slane %v2288_v36, %v4700_v28  ;;  %v2303_v42 = vrot.slane %v4093_v12, %v4700_v28  ;;  %v2311_v20 = vrot.slane %v2304_v37, %v4700_v28  ;;  %v2319_v17 = vrot.slane %v4094_v40, %v4700_v28 }
 0x920   :  { %v2260_v21 = vrot.slane %v2252_v16, %v4721_v43  ;;  %v2276_v45 = vrot.slane %v2268_v41, %v4721_v43  ;;  %v2267_v10 = vrot.slane %v2253_v63, %v4721_v43  ;;  %v2283_v11 = vrot.slane %v2269_v60, %v4721_v43 }
 0x921   :  { %v2320_v46 = vcombine.low %v2295_v13, %v2303_v42  ;;  %v2336_v47 = vcombine.low %v2311_v20, %v2319_v17  ;;  %v2321_v49 = vcombine.high %v2295_v13, %v2303_v42  ;;  %v2337_v57 = vcombine.high %v2311_v20, %v2319_v17 }
 0x922   :  { %v2284_v2 = vcombine.low %v2260_v21, %v2276_v45  ;;  %v2285_v4 = vcombine.high %v2260_v21, %v2276_v45  ;;  %v3054_v53 = vsel %vm1042_vm2, %v5143_v38, 0  ;;  %v3101_v19 = vsel %vm1042_vm2, %v5145_v39, 0 }
 0x923   :  { %v2328_v50 = vrot.slane %v2320_v46, %v4721_v43  ;;  %v2344_v62 = vrot.slane %v2336_v47, %v4721_v43  ;;  %v2335_v6 = vrot.slane %v2321_v49, %v4721_v43  ;;  %v2351_v58 = vrot.slane %v2337_v57, %v4721_v43 }
 0x924   :  { %v2286_v31 = vcombine.low %v2267_v10, %v2283_v11  ;;  %v2287_v24 = vcombine.high %v2267_v10, %v2283_v11 }
 0x925   :  { %v2352_v3 = vcombine.low %v2328_v50, %v2344_v62  ;;  %v2353_v5 = vcombine.high %v2328_v50, %v2344_v62  ;;  %v2354_v18 = vcombine.low %v2335_v6, %v2351_v58  ;;  %v2355_v27 = vcombine.high %v2335_v6, %v2351_v58 }
 0x927   :  { %v2356_v7 = vpack.c.bf16 %v2352_v3, %v2284_v2  ;;  %v2357_v9 = vpack.c.bf16 %v2353_v5, %v2285_v4  ;;  %v2358_v38 = vpack.c.bf16 %v2354_v18, %v2286_v31  ;;  %v2359_v56 = vpack.c.bf16 %v2355_v27, %v2287_v24 }
 0x929   :  { %4267 = vmatmul.mubr.msk.bf16.vlgmr.msra.gmra.mrb[20].mxu0 %vm1042_vm2, %v2356_v7  ;;  %4273 = vmatmul.mubr.msk.bf16.vlgmr.msra.gmra.mrb[28].mxu1 %vm1042_vm2, %v2357_v9 }
 0x92a   :  { %4277 = vmatpush3.bf16.xpose.msra.mxu0 %v3054_v53  ;;  %4283 = vmatpush3.bf16.xpose.msra.mxu1 %v3101_v19 }
 0x92b   :  { %4278 = vmatprep.mubr.msk.bf16.mxu0 %vm4505_vm0, %v4504_v1  ;;  %4284 = vmatprep.mubr.msk.bf16.mxu1 %vm4505_vm0, %v4504_v1 }
 0x92c   :  { %4288 = vmatprep.subr.bf16.mxu0 %v4504_v1  ;;  %4294 = vmatprep.subr.bf16.mxu1 %v4504_v1 }
 0x931   :  { %4279 = vmatmul.mubr.msk.bf16.vlgmr.msra.gmra.mrb[24].mxu0 %vm1042_vm2, %v2358_v38  ;;  %4285 = vmatmul.mubr.msk.bf16.vlgmr.msra.gmra.mrb[32].mxu1 %vm1042_vm2, %v2359_v56 }
 0x932   :  { %4290 = vmatprep.mubr.msk.bf16.mxu0 %vm4505_vm0, %v4504_v1  ;;  %4296 = vmatprep.mubr.msk.bf16.mxu1 %vm4505_vm0, %v4504_v1 }
 0x9fc   :  { %v2996_v39 = vpop.f32.mrb[20].mxu0  ;;  %v3043_v25 = vpop.f32.mrb[28].mxu1 }
 0x9fd   :  { %v3144_v29 = vmul.f32 0.35355338, %v2996_v39  ;;  %v3146_v30 = vmul.f32 0.35355338, %v3043_v25  ;;  %v4268_v22 = vpop.f32.mrb[21].mxu0  ;;  %v4274_v26 = vpop.f32.mrb[29].mxu1 }
 0x9fe   :  { %v2999_v32 = vpop.f32.mrb[22].mxu0  ;;  %v3046_v33 = vpop.f32.mrb[30].mxu1 }
 0x9ff   :  { %v3145_v35 = vmul.f32 0.35355338, %v2999_v32  ;;  %v3147_v15 = vmul.f32 0.35355338, %v3046_v33  ;;  %v4269_v36 = vpop.f32.mrb[23].mxu0  ;;  %v4275_v12 = vpop.f32.mrb[31].mxu1  ;;  %v3152_v37 = vadd.f32 %v3144_v29, %v73_v0  ;;  %v3154_v40 = vadd.f32 %v3146_v30, %v73_v0 }
 0xa01   :  { %v3160_v16 = vsel %vm1247_vm3, %v3152_v37, -inf  ;;  %v3166_v41 = vsel %vm1247_vm3, %v3154_v40, -inf  ;;  %v3153_v13 = vadd.f32 %v3145_v35, %v74_v34  ;;  %v3155_v42 = vadd.f32 %v3147_v15, %v74_v34 }
 0xa02   :  { %3161 = vmax.xlane.f32.xlu1 %v3160_v16  ;;  %3167 = vmax.xlane.f32.xlu0 %v3166_v41 }
 0xa03   :  { %v3163_v21 = vsel %vm1247_vm3, %v3153_v13, -inf  ;;  %v3169_v45 = vsel %vm1247_vm3, %v3155_v42, -inf }
 0xa04   :  { %v3090_v20 = vpop.f32.mrb[24].mxu0  ;;  %v3137_v17 = vpop.f32.mrb[32].mxu1 }
 0xa05   :  { %v3148_v46 = vmul.f32 0.35355338, %v3090_v20  ;;  %v3150_v47 = vmul.f32 0.35355338, %v3137_v17  ;;  %v4280_v49 = vpop.f32.mrb[25].mxu0  ;;  %v4286_v50 = vpop.f32.mrb[33].mxu1 }
 0xa06   :  { %v3093_v57 = vpop.f32.mrb[26].mxu0  ;;  %3164 = vmax.xlane.f32.xlu0 %v3163_v21  ;;  %3170 = vmax.xlane.f32.xlu1 %v3169_v45  ;;  %v3140_v62 = vpop.f32.mrb[34].mxu1 }
 0xa07   :  { %v3149_v63 = vmul.f32 0.35355338, %v3093_v57  ;;  %v3151_v60 = vmul.f32 0.35355338, %v3140_v62  ;;  %v4281_v2 = vpop.f32.mrb[27].mxu0  ;;  %v4287_v3 = vpop.f32.mrb[35].mxu1  ;;  %v3156_v4 = vadd.f32 %v3148_v46, %v73_v0  ;;  %v3158_v58 = vadd.f32 %v3150_v47, %v73_v0 }
 0xa09   :  { %v3172_v5 = vsel %vm1247_vm3, %v3156_v4, -inf  ;;  %v3157_v6 = vadd.f32 %v3149_v63, %v74_v34  ;;  %v3159_v9 = vadd.f32 %v3151_v60, %v74_v34  ;;  %v3178_v10 = vsel %vm1247_vm3, %v3158_v58, -inf }
 0xa0a   :  { %3173 = vmax.xlane.f32.xlu0 %v3172_v5 }
 0xa0b   :  { %v3175_v7 = vsel %vm1247_vm3, %v3157_v6, -inf  ;;  %v3181_v11 = vsel %vm1247_vm3, %v3159_v9, -inf }
 0xa0c   :  { %3176 = vmax.xlane.f32.xlu1 %v3175_v7 }
 0xa0e   :  { %3179 = vmax.xlane.f32.xlu0 %v3178_v10 }
 0xa10   :  { %3182 = vmax.xlane.f32.xlu1 %v3181_v11 }
 0xa21   :  { %2658 = vrot.lane.b32.xlu1 %v5053_v14, %s4509_s21 }
 0xa24   :  { %2656 = vrot.lane.b32.xlu0 %v5051_v8, %s4509_s21 }
 0xa25   :  { %2660 = vrot.lane.b32.xlu1 %v5085_v48, %s4509_s21 }
 0xa28   :  { %2662 = vrot.lane.b32.xlu0 %v5083_v59, %s4509_s21 }
 0xa29   :  { %2664 = vrot.lane.b32.xlu1 %v5087_v54, %s4509_s21 }
 0xa2c   :  { %2666 = vrot.lane.b32.xlu0 %v5089_v61, %s4509_s21 }
 0xa2d   :  { %2668 = vrot.lane.b32.xlu1 %v5091_v44, %s4509_s21 }
 0xa30   :  { %2670 = vrot.lane.b32.xlu0 %v5093_v51, %s4509_s21 }
 0xa8f   :  { %v3162_v14 = vpop.xlane.xlu1 %3161  ;;  %v3168_v8 = vpop.xlane.xlu0 %3167 }
 0xa90   :  { %v3184_v53 = vsub.f32 %v3152_v37, %v3162_v14  ;;  %v3186_v19 = vsub.f32 %v3154_v40, %v3168_v8 }
 0xa92   :  { %v3192_v48 = vmul.f32 1.442695, %v3184_v53  ;;  %v3196_v18 = vmul.f32 1.442695, %v3186_v19 }
 0xa93   :  { %v3165_v27 = vpop.xlane.xlu0 %3164  ;;  %v3171_v59 = vpop.xlane.xlu1 %3170 }
 0xa94   :  { %4436 = vpow2.f32 %v3192_v48  ;;  %v3185_v31 = vsub.f32 %v3153_v13, %v3165_v27  ;;  %v3187_v54 = vsub.f32 %v3155_v42, %v3171_v59 }
 0xa95   :  { %4438 = vpow2.f32 %v3196_v18 }
 0xa96   :  { %v3194_v24 = vmul.f32 1.442695, %v3185_v31  ;;  %v3198_v61 = vmul.f32 1.442695, %v3187_v54 }
 0xa97   :  { %v3174_v38 = vpop.xlane.xlu0 %3173 }
 0xa98   :  { %4440 = vpow2.f32 %v3194_v24  ;;  %v3188_v44 = vsub.f32 %v3156_v4, %v3174_v38 }
 0xa99   :  { %v3177_v56 = vpop.xlane.xlu1 %3176  ;;  %4442 = vpow2.f32 %v3198_v61 }
 0xa9a   :  { %v3200_v51 = vmul.f32 1.442695, %v3188_v44  ;;  %v3189_v39 = vsub.f32 %v3157_v6, %v3177_v56 }
 0xa9b   :  { %v3180_v25 = vpop.xlane.xlu0 %3179 }
 0xa9c   :  { %v3202_v0 = vmul.f32 1.442695, %v3189_v39  ;;  %v3190_v29 = vsub.f32 %v3158_v58, %v3180_v25  ;;  %4444 = vpow2.f32 %v3200_v51 }
 0xa9d   :  { %v3183_v30 = vpop.xlane.xlu1 %3182 }
 0xa9e   :  { %v5240_v22 = vpop.eup %4436  ;;  %4446 = vpow2.f32 %v3202_v0  ;;  %v3204_v26 = vmul.f32 1.442695, %v3190_v29  ;;  %v3191_v32 = vsub.f32 %v3159_v9, %v3183_v30 }
 0xa9f   :  { %v2657_v33 = vpop.permute.xlu0 %2656  ;;  %v3208_v34 = vsel %vm1247_vm3, %v5240_v22, 0.0  ;;  %v5244_v35 = vpop.eup %4438 }
 0xaa0   :  { %4448 = vpow2.f32 %v3204_v26  ;;  %v3206_v15 = vmul.f32 1.442695, %v3191_v32  ;;  %3209 = vadd.xlane.f32.xlu0 %v3208_v34  ;;  %v3214_v40 = vsel %vm1247_vm3, %v5244_v35, 0.0 }
 0xaa1   :  { %v2659_v36 = vpop.permute.xlu1 %2658 }
 0xaa2   :  { %v5246_v12 = vpop.eup %4440  ;;  %4450 = vpow2.f32 %v3206_v15 }
 0xaa3   :  { %v2663_v37 = vpop.permute.xlu0 %2662  ;;  %v3211_v16 = vsel %vm1247_vm3, %v5246_v12, 0.0  ;;  %v5252_v41 = vpop.eup %4442 }
 0xaa4   :  { %3215 = vadd.xlane.f32.xlu0 %v3214_v40  ;;  %3212 = vadd.xlane.f32.xlu1 %v3211_v16  ;;  %v3217_v17 = vsel %vm1247_vm3, %v5252_v41, 0.0 }
 0xaa5   :  { %v2661_v13 = vpop.permute.xlu1 %2660 }
 0xaa6   :  { %v5254_v42 = vpop.eup %4444 }
 0xaa7   :  { %v2667_v20 = vpop.permute.xlu0 %2666  ;;  %v3220_v62 = vsel %vm1247_vm3, %v5254_v42, 0.0 }
 0xaa8   :  { %v5258_v21 = vpop.eup %4446  ;;  %v2748_v45 = vcombine.low %v2659_v36, %v2667_v20  ;;  %3218 = vadd.xlane.f32.xlu1 %v3217_v17  ;;  %v2749_v46 = vcombine.high %v2659_v36, %v2667_v20 }
 0xaa9   :  { %v2665_v47 = vpop.permute.xlu1 %2664  ;;  %v3223_v49 = vsel %vm1247_vm3, %v5258_v21, 0.0 }
 0xaaa   :  { %v5262_v50 = vpop.eup %4448  ;;  %3224 = vadd.xlane.f32.xlu0 %v3223_v49  ;;  %v2756_v60 = vrot.slane %v2748_v45, %v4700_v28  ;;  %v2763_v4 = vrot.slane %v2749_v46, %v4700_v28  ;;  %v2680_v5 = vcombine.low %v2657_v33, %v2665_v47  ;;  %v2681_v6 = vcombine.high %v2657_v33, %v2665_v47 }
 0xaab   :  { %v2671_v57 = vpop.permute.xlu0 %2670  ;;  %v3226_v7 = vsel %vm1247_vm3, %v5262_v50, 0.0 }
 0xaac   :  { %v5266_v63 = vpop.eup %4450  ;;  %v2764_v2 = vcombine.low %v2663_v37, %v2671_v57  ;;  %v2765_v3 = vcombine.high %v2663_v37, %v2671_v57  ;;  %3221 = vadd.xlane.f32.xlu1 %v3220_v62  ;;  %v2688_v27 = vrot.slane %v2680_v5, %v4700_v28  ;;  %v2695_v59 = vrot.slane %v2681_v6, %v4700_v28 }
 0xaad   :  { %v2669_v58 = vpop.permute.xlu1 %2668  ;;  %v3229_v8 = vsel %vm1247_vm3, %v5266_v63, 0.0 }
 0xaae   :  { %v2772_v9 = vrot.slane %v2764_v2, %v4700_v28  ;;  %v2779_v10 = vrot.slane %v2765_v3, %v4700_v28  ;;  %v2696_v11 = vcombine.low %v2661_v13, %v2669_v58  ;;  %v2697_v14 = vcombine.high %v2661_v13, %v2669_v58  ;;  %3227 = vadd.xlane.f32.xlu0 %v3226_v7 }
 0xab0   :  { %v2780_v53 = vcombine.low %v2756_v60, %v2772_v9  ;;  %v2781_v19 = vcombine.high %v2756_v60, %v2772_v9  ;;  %v2796_v48 = vcombine.low %v2763_v4, %v2779_v10  ;;  %v2797_v18 = vcombine.high %v2763_v4, %v2779_v10  ;;  %3230 = vadd.xlane.f32.xlu1 %v3229_v8 }
 0xab1   :  { %v2704_v31 = vrot.slane %v2696_v11, %v4700_v28  ;;  %v2711_v54 = vrot.slane %v2697_v14, %v4700_v28 }
 0xab2   :  { %v2788_v24 = vrot.slane %v2780_v53, %v4721_v43  ;;  %v2795_v61 = vrot.slane %v2781_v19, %v4721_v43  ;;  %v2804_v38 = vrot.slane %v2796_v48, %v4721_v43  ;;  %v2811_v44 = vrot.slane %v2797_v18, %v4721_v43 }
 0xab3   :  { %v2712_v56 = vcombine.low %v2688_v27, %v2704_v31  ;;  %v2713_v51 = vcombine.high %v2688_v27, %v2704_v31  ;;  %v2728_v39 = vcombine.low %v2695_v59, %v2711_v54  ;;  %v2729_v25 = vcombine.high %v2695_v59, %v2711_v54 }
 0xab4   :  { %v2884_v0 = vcombine.low %v2788_v24, %v2795_v61  ;;  %v4101_v29 = vcombine.high %v2788_v24, %v2795_v61  ;;  %v2900_v30 = vcombine.low %v2804_v38, %v2811_v44  ;;  %v4102_v26 = vcombine.high %v2804_v38, %v2811_v44 }
 0xab5   :  { %v2720_v32 = vrot.slane %v2712_v56, %v4721_v43  ;;  %v2727_v33 = vrot.slane %v2713_v51, %v4721_v43  ;;  %v2736_v34 = vrot.slane %v2728_v39, %v4721_v43  ;;  %v2743_v15 = vrot.slane %v2729_v25, %v4721_v43 }
 0xab6   :  { %v2891_v36 = vrot.slane %v2884_v0, %v4700_v28  ;;  %v2899_v37 = vrot.slane %v4101_v29, %v4700_v28  ;;  %v2907_v40 = vrot.slane %v2900_v30, %v4700_v28  ;;  %v2915_v16 = vrot.slane %v4102_v26, %v4700_v28 }
 0xab7   :  { %v2816_v13 = vcombine.low %v2720_v32, %v2727_v33  ;;  %v4099_v20 = vcombine.high %v2720_v32, %v2727_v33  ;;  %v2832_v17 = vcombine.low %v2736_v34, %v2743_v15  ;;  %v4100_v45 = vcombine.high %v2736_v34, %v2743_v15 }
 0xab8   :  { %v2916_v46 = vcombine.low %v2891_v36, %v2899_v37  ;;  %v2932_v47 = vcombine.low %v2907_v40, %v2915_v16  ;;  %v2917_v49 = vcombine.high %v2891_v36, %v2899_v37  ;;  %v2933_v57 = vcombine.high %v2907_v40, %v2915_v16 }
 0xab9   :  { %v2823_v62 = vrot.slane %v2816_v13, %v4700_v28  ;;  %v2831_v60 = vrot.slane %v4099_v20, %v4700_v28  ;;  %v2839_v2 = vrot.slane %v2832_v17, %v4700_v28  ;;  %v2847_v3 = vrot.slane %v4100_v45, %v4700_v28 }
 0xaba   :  { %v2924_v4 = vrot.slane %v2916_v46, %v4721_v43  ;;  %v2940_v5 = vrot.slane %v2932_v47, %v4721_v43  ;;  %v2931_v6 = vrot.slane %v2917_v49, %v4721_v43  ;;  %v2947_v58 = vrot.slane %v2933_v57, %v4721_v43 }
 0xabb   :  { %v2848_v7 = vcombine.low %v2823_v62, %v2831_v60  ;;  %v2864_v9 = vcombine.low %v2839_v2, %v2847_v3  ;;  %v2849_v10 = vcombine.high %v2823_v62, %v2831_v60  ;;  %v2865_v11 = vcombine.high %v2839_v2, %v2847_v3 }
 0xabc   :  { %v2950_v14 = vcombine.low %v2931_v6, %v2947_v58  ;;  %v2951_v8 = vcombine.high %v2931_v6, %v2947_v58  ;;  %v2948_v27 = vcombine.low %v2924_v4, %v2940_v5  ;;  %v2949_v59 = vcombine.high %v2924_v4, %v2940_v5 }
 0xabd   :  { %v2856_v53 = vrot.slane %v2848_v7, %v4721_v43  ;;  %v2872_v19 = vrot.slane %v2864_v9, %v4721_v43  ;;  %v2863_v48 = vrot.slane %v2849_v10, %v4721_v43  ;;  %v2879_v18 = vrot.slane %v2865_v11, %v4721_v43 }
 0xabf   :  { %v2880_v31 = vcombine.low %v2856_v53, %v2872_v19  ;;  %v2881_v54 = vcombine.high %v2856_v53, %v2872_v19  ;;  %v2882_v24 = vcombine.low %v2863_v48, %v2879_v18  ;;  %v2883_v61 = vcombine.high %v2863_v48, %v2879_v18 }
 0xac1   :  { %v2952_v38 = vpack.c.bf16 %v2948_v27, %v2880_v31  ;;  %v2953_v44 = vpack.c.bf16 %v2949_v59, %v2881_v54  ;;  %v2954_v56 = vpack.c.bf16 %v2950_v14, %v2882_v24  ;;  %v2955_v51 = vpack.c.bf16 %v2951_v8, %v2883_v61 }
 0xac3   :  { %4289 = vmatpush3.bf16.msra.mxu0 %v2952_v38  ;;  %4295 = vmatpush3.bf16.msra.mxu1 %v2953_v44 }
 0xac4   :  { %4300 = vmatprep.subr.bf16.mxu0 %v4504_v1  ;;  %4306 = vmatprep.subr.bf16.mxu1 %v4504_v1 }
 0xb2d   :  { %v3210_v39 = vpop.xlane.xlu0 %3209 }
 0xb2e   :  { %4452 = vrcp.f32 %v3210_v39 }
 0xb31   :  { %v3216_v25 = vpop.xlane.xlu0 %3215  ;;  %v3213_v0 = vpop.xlane.xlu1 %3212 }
 0xb32   :  { %4454 = vrcp.f32 %v3213_v0 }
 0xb33   :  { %4456 = vrcp.f32 %v3216_v25 }
 0xb35   :  { %v3219_v29 = vpop.xlane.xlu1 %3218 }
 0xb36   :  { %4458 = vrcp.f32 %v3219_v29 }
 0xb37   :  { %v3225_v30 = vpop.xlane.xlu0 %3224 }
 0xb38   :  { %4460 = vrcp.f32 %v3225_v30  ;;  %v4453_v32 = vpop.eup %4452 }
 0xb39   :  { %v3222_v26 = vpop.xlane.xlu1 %3221  ;;  %v3240_v37 = vmul.f32 %v4453_v32, %v5240_v22 }
 0xb3a   :  { %4462 = vrcp.f32 %v3222_v26 }
 0xb3b   :  { %v3228_v33 = vpop.xlane.xlu0 %3227 }
 0xb3c   :  { %4464 = vrcp.f32 %v3228_v33  ;;  %v4455_v34 = vpop.eup %4454 }
 0xb3d   :  { %v3231_v15 = vpop.xlane.xlu1 %3230  ;;  %v4457_v36 = vpop.eup %4456  ;;  %v3241_v40 = vmul.f32 %v4455_v34, %v5246_v12 }
 0xb3e   :  { %4466 = vrcp.f32 %v3231_v15  ;;  %v3242_v20 = vmul.f32 %v4457_v36, %v5244_v35 }
 0xb3f   :  { %v3248_v13 = vpack.c.bf16 %v3241_v40, %v3240_v37 }
 0xb40   :  { %v4459_v16 = vpop.eup %4458 }
 0xb41   :  { %v3243_v17 = vmul.f32 %v4459_v16, %v5252_v41  ;;  %4291 = vmatmul.mubr.msk.bf16.vlgmr.msra.gmra.mrb[28].mxu0 %vm1247_vm3, %v3248_v13 }
 0xb42   :  { %v4461_v45 = vpop.eup %4460  ;;  %4301 = vmatpush3.bf16.msra.mxu0 %v2954_v56  ;;  %4302 = vmatprep.mubr.msk.bf16.mxu0 %vm4505_vm0, %v4504_v1 }
 0xb43   :  { %v3249_v46 = vpack.c.bf16 %v3243_v17, %v3242_v20  ;;  %4312 = vmatprep.subr.bf16.mxu0 %v4504_v1  ;;  %v3245_v22 = vmul.f32 %v4461_v45, %v5258_v21 }
 0xb44   :  { %v4463_v47 = vpop.eup %4462 }
 0xb45   :  { %v3244_v12 = vmul.f32 %v4463_v47, %v5254_v42  ;;  %4297 = vmatmul.mubr.msk.bf16.vlgmr.msra.gmra.mrb[36].mxu1 %vm1247_vm3, %v3249_v46 }
 0xb46   :  { %v4465_v35 = vpop.eup %4464  ;;  %4307 = vmatpush3.bf16.msra.mxu1 %v2955_v51  ;;  %4308 = vmatprep.mubr.msk.bf16.mxu1 %vm4505_vm0, %v4504_v1 }
 0xb47   :  { %v3250_v41 = vpack.c.bf16 %v3245_v22, %v3244_v12  ;;  %4320 = vmatprep.subr.bf16.mxu1 %v4504_v1  ;;  %v3246_v57 = vmul.f32 %v4465_v35, %v5262_v50 }
 0xb48   :  { %v4467_v49 = vpop.eup %4466 }
 0xb49   :  { %v3247_v62 = vmul.f32 %v4467_v49, %v5266_v63  ;;  %4303 = vmatmul.mubr.msk.bf16.vlgmr.msra.gmra.mrb[32].mxu0 %vm1247_vm3, %v3250_v41 }
 0xb4a   :  { %4316 = vmatprep.mubr.msk.bf16.mxu0 %vm4505_vm0, %v4504_v1 }
 0xb4b   :  { %v3251_v21 = vpack.c.bf16 %v3247_v62, %v3246_v57 }
 0xb4d   :  { %4309 = vmatmul.mubr.msk.bf16.vlgmr.msra.gmra.mrb[40].mxu1 %vm1247_vm3, %v3251_v21 }
 0xb4e   :  { %4324 = vmatprep.mubr.msk.bf16.mxu1 %vm4505_vm0, %v4504_v1 }
 0xc14   :  { %v3289_v42 = vpop.f32.mrb[28].mxu0 }
 0xc15   :  { %v4292_v60 = vpop.f32.mrb[29].mxu0 }
 0xc16   :  { %v3292_v2 = vpop.f32.mrb[30].mxu0 }
 0xc17   :  { %v4293_v3 = vpop.f32.mrb[31].mxu0 }
 0xc18   :  { %v3333_v4 = vpop.f32.mrb[36].mxu1 }
 0xc19   :  { %v4298_v5 = vpop.f32.mrb[37].mxu1 }
 0xc1a   :  { %v3336_v50 = vpop.f32.mrb[38].mxu1 }
 0xc1b   :  { %v4299_v6 = vpop.f32.mrb[39].mxu1 }
 0xc1c   :  { %v3377_v63 = vpop.f32.mrb[32].mxu0 }
 0xc1d   :  { %v3428_v58 = vcombine.low %v3289_v42, %v3377_v63  ;;  %v3429_v7 = vcombine.high %v3289_v42, %v3377_v63  ;;  %v4304_v9 = vpop.f32.mrb[33].mxu0 }
 0xc1e   :  { %v3380_v10 = vpop.f32.mrb[34].mxu0 }
 0xc1f   :  { %v3496_v11 = vcombine.low %v3292_v2, %v3380_v10  ;;  %v3497_v14 = vcombine.high %v3292_v2, %v3380_v10  ;;  %v4305_v8 = vpop.f32.mrb[35].mxu0  ;;  %v3436_v27 = vrot.slane %v3428_v58, %v4700_v28  ;;  %v3443_v59 = vrot.slane %v3429_v7, %v4700_v28  ;;  %v4392_v2 = vld [vmem:[%s5461_s12] sm:$0xff]  }
 0xc20   :  { %v3421_v53 = vpop.f32.mrb[40].mxu1  ;;  %4313 = vmatpush3.bf16.msra.mxu0 %v4392_v2 }
 0xc21   :  { %v3444_v19 = vcombine.low %v3333_v4, %v3421_v53  ;;  %v3445_v48 = vcombine.high %v3333_v4, %v3421_v53  ;;  %v4310_v18 = vpop.f32.mrb[41].mxu1  ;;  %v3504_v0 = vrot.slane %v3496_v11, %v4700_v28  ;;  %v3511_v29 = vrot.slane %v3497_v14, %v4700_v28  ;;  %4314 = vmatprep.subr.bf16.mxu0 %v4504_v1 }
 0xc22   :  { %v3424_v31 = vpop.f32.mrb[42].mxu1  ;;  %v4393_v18 = vld [vmem:[%s5461_s12 + $0x8] sm:$0xff]  }
 0xc23   :  { %v3452_v54 = vrot.slane %v3444_v19, %v4700_v28  ;;  %v3459_v24 = vrot.slane %v3445_v48, %v4700_v28  ;;  %v3512_v61 = vcombine.low %v3336_v50, %v3424_v31  ;;  %v3513_v38 = vcombine.high %v3336_v50, %v3424_v31  ;;  %v4311_v44 = vpop.f32.mrb[43].mxu1 }
 0xc24   :  { %4315 = vmatpush3.bf16.msra.mxu0 %v4393_v18 }
 0xc25   :  { %v3460_v56 = vcombine.low %v3436_v27, %v3452_v54  ;;  %v3461_v51 = vcombine.high %v3436_v27, %v3452_v54  ;;  %v3476_v39 = vcombine.low %v3443_v59, %v3459_v24  ;;  %v3477_v25 = vcombine.high %v3443_v59, %v3459_v24  ;;  %4328 = vmatprep.subr.bf16.mxu0 %v4504_v1 }
 0xc26   :  { %v3520_v30 = vrot.slane %v3512_v61, %v4700_v28  ;;  %v3527_v26 = vrot.slane %v3513_v38, %v4700_v28 }
 0xc27   :  { %v3468_v32 = vrot.slane %v3460_v56, %v4721_v43  ;;  %v3475_v33 = vrot.slane %v3461_v51, %v4721_v43  ;;  %v3484_v34 = vrot.slane %v3476_v39, %v4721_v43  ;;  %v3491_v15 = vrot.slane %v3477_v25, %v4721_v43 }
 0xc28   :  { %v3528_v36 = vcombine.low %v3504_v0, %v3520_v30  ;;  %v3529_v37 = vcombine.high %v3504_v0, %v3520_v30  ;;  %v3544_v40 = vcombine.low %v3511_v29, %v3527_v26  ;;  %v3545_v16 = vcombine.high %v3511_v29, %v3527_v26 }
 0xc29   :  { %v3564_v13 = vcombine.low %v3468_v32, %v3475_v33  ;;  %v4111_v20 = vcombine.high %v3468_v32, %v3475_v33  ;;  %v3580_v17 = vcombine.low %v3484_v34, %v3491_v15  ;;  %v4112_v45 = vcombine.high %v3484_v34, %v3491_v15 }
 0xc2a   :  { %v3536_v46 = vrot.slane %v3528_v36, %v4721_v43  ;;  %v3543_v47 = vrot.slane %v3529_v37, %v4721_v43  ;;  %v3552_v22 = vrot.slane %v3544_v40, %v4721_v43  ;;  %v3559_v12 = vrot.slane %v3545_v16, %v4721_v43 }
 0xc2b   :  { %v3571_v35 = vrot.slane %v3564_v13, %v4700_v28  ;;  %v3579_v41 = vrot.slane %v4111_v20, %v4700_v28  ;;  %v3587_v49 = vrot.slane %v3580_v17, %v4700_v28  ;;  %v3595_v57 = vrot.slane %v4112_v45, %v4700_v28 }
 0xc2c   :  { %v3632_v62 = vcombine.low %v3536_v46, %v3543_v47  ;;  %v4113_v21 = vcombine.high %v3536_v46, %v3543_v47  ;;  %v3648_v42 = vcombine.low %v3552_v22, %v3559_v12  ;;  %v4114_v60 = vcombine.high %v3552_v22, %v3559_v12  ;;  %v4115_v47 = vld [vmem:[%s5462_s13] ss:$0 sm:$0xff] }
 0xc2d   :  { %v3597_v3 = vcombine.high %v3571_v35, %v3579_v41  ;;  %v3613_v4 = vcombine.high %v3587_v49, %v3595_v57  ;;  %v3596_v5 = vcombine.low %v3571_v35, %v3579_v41  ;;  %v3612_v50 = vcombine.low %v3587_v49, %v3595_v57 }
 0xc2e   :  { %v3639_v6 = vrot.slane %v3632_v62, %v4700_v28  ;;  %v3647_v63 = vrot.slane %v4113_v21, %v4700_v28  ;;  %v3655_v58 = vrot.slane %v3648_v42, %v4700_v28  ;;  %v3663_v7 = vrot.slane %v4114_v60, %v4700_v28 }
 0xc2f   :  { %v3611_v9 = vrot.slane %v3597_v3, %v4721_v43  ;;  %v3627_v10 = vrot.slane %v3613_v4, %v4721_v43  ;;  %v3604_v11 = vrot.slane %v3596_v5, %v4721_v43  ;;  %v3620_v14 = vrot.slane %v3612_v50, %v4721_v43 }
 0xc30   :  { %v3665_v8 = vcombine.high %v3639_v6, %v3647_v63  ;;  %v3681_v53 = vcombine.high %v3655_v58, %v3663_v7  ;;  %v3664_v19 = vcombine.low %v3639_v6, %v3647_v63  ;;  %v3680_v48 = vcombine.low %v3655_v58, %v3663_v7 }
 0xc31   :  { %v3630_v28 = vcombine.low %v3611_v9, %v3627_v10  ;;  %v3628_v27 = vcombine.low %v3604_v11, %v3620_v14  ;;  %v3629_v59 = vcombine.high %v3604_v11, %v3620_v14  ;;  %v3631_v31 = vcombine.high %v3611_v9, %v3627_v10  ;;  %v4395_v9 = vld [vmem:[%s5463_s14 + $0x8] sm:$0xff]   ;;  %v4396_v10 = vld [vmem:[%s5465_s16] sm:$0xff]  }
 0xc32   :  { %v3679_v54 = vrot.slane %v3665_v8, %v4721_v43  ;;  %v3695_v24 = vrot.slane %v3681_v53, %v4721_v43  ;;  %v3672_v61 = vrot.slane %v3664_v19, %v4721_v43  ;;  %v3688_v38 = vrot.slane %v3680_v48, %v4721_v43  ;;  %v4397_v11 = vld [vmem:[%s5465_s16 + $0x8] sm:$0xff]  }
 0xc34   :  { %v3698_v44 = vcombine.low %v3679_v54, %v3695_v24  ;;  %v3697_v56 = vcombine.high %v3672_v61, %v3688_v38  ;;  %v3696_v51 = vcombine.low %v3672_v61, %v3688_v38  ;;  %v3699_v39 = vcombine.high %v3679_v54, %v3695_v24 }
 0xc36   :  { %v4374_v25 = vpack.i.bf16 %v3698_v44, %v3630_v28  ;;  %v4369_v0 = vpack.i.bf16 %v3697_v56, %v3629_v59  ;;  %v4379_v29 = vpack.i.bf16 %v3699_v39, %v3631_v31  ;;  %v3828_v28 = vsub.s32 1, %v4693_v23  ;;  %v5408_v59 = vld [vmem:[%s5467_s18] sm:$0x7] }
 0xc37   :  { %v4479_v44 = vld [vmem:[%s5468_s19] sm:$0x7] }
 0xc38   :  { %4375 = vrot.lane.b32.xlu1 %v4374_v25, %s4513_s6  ;;  %4370 = vrot.lane.b32.xlu0 %v4369_v0, %s4514_s29  ;;  %v3829_v31 = vrot.slane %v5408_v59, %v3828_v28  ;;  %v3835_v56 = vrot.slane %v4479_v44, %v3828_v28 }
 0xc3c   :  { %4380 = vrot.lane.b32.xlu1 %v4379_v29, %s4515_s1  ;;  %v4398_v29 = vld [vmem:[%s5465_s16 + $0x10] sm:$0xff]  }
 0xcaa   :  { %v4376_v30 = vpop.permute.xlu1 %4375  ;;  %v4371_v26 = vpop.permute.xlu0 %4370 }
 0xcab   :  { %v4373_v32 = vunpack.i.h.bf16 %v4371_v26  ;;  %v4372_v43 = vunpack.i.l.bf16 %v4371_v26  ;;  %v4378_v33 = vunpack.i.h.bf16 %v4376_v30  ;;  %v4377_v34 = vunpack.i.l.bf16 %v4376_v30  ;;  %v4399_v30 = vld [vmem:[%s5465_s16 + $0x18] sm:$0xff]   ;;  %v4119_v26 = vld [vmem:[%s5464_s15] ss:$0 sm:$0xff]  ;;  %s4516_s15 = smov [#allocation2]  }
 0xcac   :  { %s4040_s16 = sshll.u32 %s4516_s15, 4  ;;  %s4041_s16 = int_to_ptr.vmem [resolvable:$true] %s4040_s16 }
 0xcad   :  { %v3724_v15 = vsel %vm1042_vm2, %v3628_v27, %v4372_v43  ;;  %v3725_v36 = vsel %vm1042_vm2, %v3696_v51, %v4373_v32  ;;  %p4485_p1 = scmp.lt.s32.totalorder %s4041_s16, %s4041_s16 }
 0xcae   :  { %v4381_v37 = vpop.permute.xlu1 %4380  ;;  %v3726_v13 = vsel %vm1247_vm3, %v3724_v15, %v4377_v34  ;;  %v3727_v20 = vsel %vm1247_vm3, %v3725_v36, %v4378_v33 }
 0xcaf   :  { %v4383_v40 = vunpack.i.h.bf16 %v4381_v37  ;;  %v4382_v16 = vunpack.i.l.bf16 %v4381_v37 }
 0xcb1   :  { %v3728_v17 = vsel %vm1816_vm4, %v3726_v13, %v4382_v16  ;;  %v3729_v45 = vsel %vm1816_vm4, %v3727_v20, %v4383_v40 }
 0xcb2   :  { %v3730_v46 = vpack.c.bf16 %v3729_v45, %v3728_v17 }
 0xcb4   :  { %4317 = vmatmul.mubr.msk.bf16.vlgmr.msra.gmra.mrb[36].mxu0 %vm101_vm1, %v3730_v46 }
 0xcb5   :  { %4336 = vmatprep.mubr.msk.bf16.mxu0 %vm4505_vm0, %v4504_v1  ;;  %4329 = vmatpush3.bf16.msra.mxu0 %v4396_v10 }
 0xcb6   :  { %4330 = vmatprep.subr.bf16.mxu0 %v4504_v1 }
 0xcb9   :  { %4331 = vmatpush3.bf16.msra.mxu0 %v4397_v11 }
 0xcba   :  { %4332 = vmatprep.subr.bf16.mxu0 %v4504_v1 }
 0xcbd   :  { %4333 = vmatpush3.bf16.msra.mxu0 %v4398_v29 }
 0xcbe   :  { %4334 = vmatprep.subr.bf16.mxu0 %v4504_v1 }
 0xcc1   :  { %4335 = vmatpush3.bf16.msra.mxu0 %v4399_v30 }
 0xd87   :  { %v3791_v22 = vpop.f32.mrb[36].mxu0 }
 0xd88   :  { %v3792_v12 = vadd.f32 %v4115_v47, %v3791_v22  ;;  %v4318_v35 = vpop.f32.mrb[37].mxu0 }
 0xd89   :  { %v3794_v41 = vpop.f32.mrb[38].mxu0 }
 0xd8a   :  { %v3795_v49 = vadd.f32 %v4115_v47, %v3794_v41  ;;  %v4319_v57 = vpop.f32.mrb[39].mxu0  ;;  %v3798_v62 = vadd.f32 %v3792_v12, %v5074_v52 }
 0xd8c   :  { %v3800_v21 = vsel %vm101_vm1, %v3798_v62, 0.0  ;;  %v3799_v42 = vadd.f32 %v3795_v49, %v5076_v55  ;;  %v4394_v55 = vld [vmem:[%s5463_s14] sm:$0xff]  }
 0xd8d   :  { %3801 = vadd.xlane.f32.xlu0 %v3800_v21  ;;  %4321 = vmatpush3.bf16.msra.mxu1 %v4394_v55  ;;  %v4023_v55 = vsub.s32 2, %v4693_v23 }
 0xd8e   :  { %v3803_v60 = vsel %vm101_vm1, %v3799_v42, 0.0  ;;  %4322 = vmatprep.subr.bf16.mxu1 %v4504_v1  ;;  %v4123_v1 = vld [vmem:[%s5466_s17] ss:$0 sm:$0xff]  ;;  %s4480_s17 = scalar_lea.vmem %s4041_s16, 256 }
 0xd8f   :  { %3804 = vadd.xlane.f32.xlu1 %v3803_v60  ;;  %p4481_p0 = scmp.ne.s32.totalorder %s4041_s16, %s4480_s17  ;;  %p4486_p2 = scmp.lt.s32.totalorder %s4480_s17, %s4480_s17 }
 0xd91   :  { %4323 = vmatpush3.bf16.msra.mxu1 %v4395_v9  ;;  %v4024_v9 = vrot.slane %v5408_v59, %v4023_v55  ;;  %p4487_p3 = por %p4486_p2, %p4485_p1 }
 0xd93   :  { %p4488_p4 = pnand %p4487_p3, %p4481_p0 }
 0xe1a   :  { %v3802_v2 = vpop.xlane.xlu0 %3801 }
 0xe1b   :  { %v3806_v3 = vmul.f32 0.03125, %v3802_v2 }
 0xe1c   :  { %v3805_v4 = vpop.xlane.xlu1 %3804 }
 0xe1d   :  { %v3808_v5 = vsub.f32 %v3798_v62, %v3806_v3  ;;  %v3807_v50 = vmul.f32 0.03125, %v3805_v4 }
 0xe1f   :  { %v3809_v6 = vsub.f32 %v3799_v42, %v3807_v50  ;;  %v3810_v63 = vmul.f32 %v3808_v5, %v3808_v5 }
 0xe21   :  { %v3812_v58 = vsel %vm101_vm1, %v3810_v63, 0.0  ;;  %v3811_v7 = vmul.f32 %v3809_v6, %v3809_v6 }
 0xe22   :  { %3813 = vadd.xlane.f32.xlu0 %v3812_v58 }
 0xe23   :  { %v3815_v52 = vsel %vm101_vm1, %v3811_v7, 0.0 }
 0xe26   :  { %3816 = vadd.xlane.f32.xlu0 %v3815_v52 }
 0xeaf   :  { %v3814_v14 = vpop.xlane.xlu0 %3813 }
 0xeb0   :  { %v3818_v8 = vmul.f32 0.03125, %v3814_v14  ;;  %v4030_v14 = vrot.slane %v4479_v44, %v4023_v55 }
 0xeb2   :  { %v3820_v53 = vadd.f32 1e-05, %v3818_v8 }
 0xeb3   :  { %v3817_v19 = vpop.xlane.xlu0 %3816 }
 0xeb4   :  { %4468 = vrsqrt.f32 %v3820_v53  ;;  %v3819_v48 = vmul.f32 0.03125, %v3817_v19 }
 0xeb6   :  { %v3821_v18 = vadd.f32 1e-05, %v3819_v48 }
 0xeb8   :  { %4470 = vrsqrt.f32 %v3821_v18 }
 0xebe   :  { %v4469_v27 = vpop.eup %4468 }
 0xebf   :  { %v3824_v54 = vmul.f32 %v4469_v27, %v3808_v5 }
 0xec1   :  { %v3830_v61 = vmul.f32 %v3829_v31, %v3824_v54 }
 0xec2   :  { %v4471_v24 = vpop.eup %4470 }
 0xec3   :  { %v3825_v38 = vmul.f32 %v4471_v24, %v3809_v6  ;;  %v3836_v39 = vadd.f32 %v3835_v56, %v3830_v61 }
 0xec5   :  { %v3831_v51 = vmul.f32 %v3829_v31, %v3825_v38 }
 0xec7   :  { %v3837_v25 = vadd.f32 %v3835_v56, %v3831_v51 }
 0xec9   :  { %v3838_v0 = vpack.c.bf16 %v3837_v25, %v3836_v39 }
 0xecb   :  { %4325 = vmatmul.mubr.msk.bf16.vlgmr.msra.gmra.mrb[44].mxu1 %vm101_vm1, %v3838_v0 }
 0xf9e   :  { %v3899_v32 = vpop.f32.mrb[44].mxu1 }
 0xf9f   :  { %v3900_v43 = vadd.f32 %v4119_v26, %v3899_v32  ;;  %v4326_v33 = vpop.f32.mrb[45].mxu1 }
 0xfa0   :  { %v3902_v34 = vpop.f32.mrb[46].mxu1 }
 0xfa1   :  { %v3903_v15 = vadd.f32 %v4119_v26, %v3902_v34  ;;  %v4327_v36 = vpop.f32.mrb[47].mxu1  ;;  %v3906_v37 = vmax.f32 %v3900_v43, 0.0 }
 0xfa3   :  { %v3907_v40 = vmax.f32 %v3903_v15, 0.0 }
 0xfa5   :  { %v3908_v16 = vpack.c.bf16 %v3907_v40, %v3906_v37 }
 0xfa7   :  { %4337 = vmatmul.mubr.msk.bf16.vlgmr.msra.gmra.mrb[40].mxu0 %vm3948_vm5, %v3908_v16 }
0x107a   :  { %v3986_v13 = vpop.f32.mrb[40].mxu0 }
0x107b   :  { %v3987_v20 = vadd.f32 %v4123_v1, %v3986_v13  ;;  %v4338_v17 = vpop.f32.mrb[41].mxu0 }
0x107c   :  { %v3989_v45 = vpop.f32.mrb[42].mxu0 }
0x107d   :  { %v3990_v46 = vadd.f32 %v4123_v1, %v3989_v45  ;;  %v4339_v47 = vpop.f32.mrb[43].mxu0  ;;  %v3993_v22 = vadd.f32 %v3987_v20, %v3836_v39 }
0x107f   :  { %v3995_v12 = vsel %vm101_vm1, %v3993_v22, 0.0  ;;  %v3994_v35 = vadd.f32 %v3990_v46, %v3837_v25 }
0x1080   :  { %3996 = vadd.xlane.f32.xlu1 %v3995_v12 }
0x1081   :  { %v3998_v41 = vsel %vm101_vm1, %v3994_v35, 0.0 }
0x1082   :  { %3999 = vadd.xlane.f32.xlu0 %v3998_v41 }
0x110d   :  { %v3997_v49 = vpop.xlane.xlu1 %3996 }
0x110e   :  { %v4001_v57 = vmul.f32 0.03125, %v3997_v49 }
0x110f   :  { %v4000_v62 = vpop.xlane.xlu0 %3999 }
0x1110   :  { %v4003_v21 = vsub.f32 %v3993_v22, %v4001_v57  ;;  %v4002_v42 = vmul.f32 0.03125, %v4000_v62 }
0x1112   :  { %v4004_v60 = vsub.f32 %v3994_v35, %v4002_v42  ;;  %v4005_v2 = vmul.f32 %v4003_v21, %v4003_v21 }
0x1114   :  { %v4007_v3 = vsel %vm101_vm1, %v4005_v2, 0.0  ;;  %v4006_v4 = vmul.f32 %v4004_v60, %v4004_v60 }
0x1115   :  { %4008 = vadd.xlane.f32.xlu1 %v4007_v3 }
0x1116   :  { %v4010_v5 = vsel %vm101_vm1, %v4006_v4, 0.0 }
0x1117   :  { %4011 = vadd.xlane.f32.xlu0 %v4010_v5 }
0x11a2   :  { %v4009_v50 = vpop.xlane.xlu1 %4008 }
0x11a3   :  { %v4013_v6 = vmul.f32 0.03125, %v4009_v50 }
0x11a4   :  { %v4012_v63 = vpop.xlane.xlu0 %4011 }
0x11a5   :  { %v4015_v58 = vadd.f32 1e-05, %v4013_v6  ;;  %v4014_v7 = vmul.f32 0.03125, %v4012_v63 }
0x11a7   :  { %4472 = vrsqrt.f32 %v4015_v58  ;;  %v4016_v52 = vadd.f32 1e-05, %v4014_v7 }
0x11a9   :  { %4474 = vrsqrt.f32 %v4016_v52 }
0x11b1   :  { %v4473_v10 = vpop.eup %4472 }
0x11b2   :  { %v4019_v11 = vmul.f32 %v4473_v10, %v4003_v21 }
0x11b3   :  { %v4475_v8 = vpop.eup %4474 }
0x11b4   :  { %v4020_v53 = vmul.f32 %v4475_v8, %v4004_v60  ;;  %v4025_v19 = vmul.f32 %v4024_v9, %v4019_v11 }
0x11b6   :  { %v4026_v48 = vmul.f32 %v4024_v9, %v4020_v53  ;;  %v4031_v18 = vadd.f32 %v4030_v14, %v4025_v19 }
0x11b8   :  { %v4032_v28 = vadd.f32 %v4030_v14, %v4026_v48  ;;  %4033 = vst.msk [vmem:[#allocation2] sm:$0xff] %vm101_vm1, %v4031_v18 }
0x11ba   :  { %4034 = vst.msk [vmem:[#allocation2 + $0x8] sm:$0xff] %vm101_vm1, %v4032_v28 }
0x11bb   :  { %4491 = shalt.err (!%p4488_p4)
}
0x11bc   :  { %s4492_s10 = scalar_lea.hbm %s5469_s20, 256 }
0x11bd   :  { %p4493_p5 = scmp.ne.s32.totalorder %s5469_s20, %s4492_s10  ;;  %p4496_p6 = scmp.lt.u32.totalorder %s4492_s10, %s5469_s20 }
0x11bf   :  { %p4498_p7 = pnand %p4496_p6, %p4493_p5 }
0x11c1   :  { %4501 = shalt.err (!%p4498_p7)
}
0x11c2   :  { %s4517_s1 = smov 128  }
0x11c3   :  { %4046 = dma.vmem_to_hbm [thread:$0]  %s4041_s16, 256, %s5469_s20, [#allocation3], %s4517_s1, %s4517_s1, %s4514_s29  }
0x11c4   :  { %4502 = dma.done.wait [#allocation3], 256  }
0x11c5   :  { %4503 = vsyncadd [#allocation3], 4294967040 }
0x11c6   :  { %4050 = vsyncpa [#allocation3], 1 }

</bundles_post_ra>
